<compile_context>
chip_gen: v6e
topology: v6e:2x2x1
jax: 0.10.0
libtpu: 0.0.40
codegen_flags: <defaults>
</compile_context>

<pallas_src>
import functools

import jax
import jax.numpy as jnp
from jax import lax
from jax.experimental import pallas as pl
from jax.experimental.pallas import tpu as pltpu


def _srnn_kernel(x_ref, w_ref, r_ref, spk_out_ref,
                 h1_ref, state_ref,
                 *, alpha, beta, thr, tile_t, batch):
    """One grid step = TILE_T sequential time steps for the whole batch.

    x_ref       : (TILE_T * B, in_dim)    time-major rows = (t, b), f32
    w_ref       : (in_dim, out_pad)       input weights (resident, bf16/f32)
    r_ref       : (out_pad, out_pad)      recurrent weights (resident, bf16/f32)
    spk_out_ref : (B, TILE_T, out_pad)    spike output block, batch-major so no
                                          post-kernel transpose is needed; f32
    h1_ref      : (TILE_T * B, out_pad)   VMEM scratch for the hoisted projection
    state_ref   : (3, B, out_pad)         VMEM scratch carrying (syn, mem, spk)
                                          across grid steps (f32)
    """
    i = pl.program_id(0)

    # Initialize recurrent state once, at the first time tile.
    @pl.when(i == 0)
    def _():
        state_ref[...] = jnp.zeros_like(state_ref)

    # --- Hoisted input projection: one lane-dense MXU matmul per time tile. ---
    h1_ref[...] = jnp.dot(x_ref[...].astype(w_ref.dtype), w_ref[...],
                          preferred_element_type=jnp.float32)

    r = r_ref[...]                       # keep recurrent weights in vregs
    syn = state_ref[0]
    mem = state_ref[1]
    spk = state_ref[2]

    # --- Serial recurrence over the TILE_T steps of this tile. -------------
    # tile_t is a compile-time constant, so a static Python loop gives fully
    # static (unmasked, lane-dense) loads/stores.  For very large tile_t /
    # out_dim, switch to lax.fori_loop(..., unroll=4) to bound vreg pressure.
    for t in range(tile_t):
        h_t = h1_ref[pl.ds(t * batch, batch), :] + jnp.dot(
            spk.astype(r.dtype), r, preferred_element_type=jnp.float32)
        out = (mem - thr > 0.0).astype(jnp.float32)     # heaviside spike fn
        new_syn = alpha * syn + h_t
        new_mem = (beta * mem + syn) * (1.0 - out)      # reset on spike
        spk_out_ref[:, t, :] = out                      # (B, out_pad) VMEM store
        syn, mem, spk = new_syn, new_mem, out

    # Spill state once per tile for the next grid step.
    state_ref[0] = syn
    state_ref[1] = mem
    state_ref[2] = spk


def srnn_dense2sparse_forward(x, dweight_w, dweight_r, args, *, tile_t=32,
                              weights_dtype=jnp.bfloat16, nonzero_size=None):
    """x: (B, T, in_dim) float32.  Returns (spk_rec (B, T, out_dim), aout_idx)."""
    B, T, in_dim = x.shape
    out_dim = dweight_w.shape[1]
    nb_hidden = dweight_r.shape[0]
    assert nb_hidden == out_dim, "recurrent mm requires nb_hidden == out_dim"

    alpha = float(args["alpha"])
    beta = float(args["beta"])
    thr = float(args["thr"])

    # --- time tiling ------------------------------------------------------
    tile_t = max(1, min(tile_t, T))
    n_tiles = pl.cdiv(T, tile_t)
    if n_tiles > 1 and tile_t % 8 != 0:
        # second-to-last block dim of the output must be a multiple of 8 when
        # the block is not the full array extent
        tile_t = max(8, (tile_t // 8) * 8)
        n_tiles = pl.cdiv(T, tile_t)
    t_pad = n_tiles * tile_t

    # --- lane-dense padding of the output / weight dimension ---------------
    out_pad = ((out_dim + 127) // 128) * 128
    w = dweight_w.astype(weights_dtype)
    r = dweight_r.astype(weights_dtype)
    if out_pad != out_dim:
        # zero-padded columns/rows never contribute: padded lanes of h_t are 0,
        # padded rows of R are 0, so the recurrence and spikes stay exact.
        w = jnp.pad(w, ((0, 0), (0, out_pad - out_dim)))
        r = jnp.pad(r, ((0, out_pad - nb_hidden), (0, out_pad - out_dim)))

    # Time-major layout flattened to 2-D rows = (time, batch) so the per-tile
    # input projection is one well-shaped matmul and the kernel needs no
    # reshapes.  (If the producer can emit time-major activations directly,
    # this transpose disappears entirely.)
    x_tm = jnp.transpose(x, (1, 0, 2))                      # (T, B, in_dim)
    if t_pad != T:
        x_tm = jnp.pad(x_tm, ((0, t_pad - T), (0, 0), (0, 0)))
    x_2d = x_tm.reshape(t_pad * B, in_dim).astype(jnp.float32)

    kernel = functools.partial(_srnn_kernel, alpha=alpha, beta=beta, thr=thr,
                               tile_t=tile_t, batch=B)

    # VMEM budget: double-buffered x / out blocks, both (revolving) weight
    # buffers, h1 + state scratch, plus headroom.
    itemsize_w = jnp.dtype(weights_dtype).itemsize
    vmem_est = (2 * (tile_t * B * in_dim * 4)
                + 2 * (in_dim * out_pad * itemsize_w)
                + 2 * (out_pad * out_pad * itemsize_w)
                + 2 * (B * tile_t * out_pad * 4)
                + (tile_t * B * out_pad * 4)
                + (3 * B * out_pad * 4))
    vmem_limit = int(min(64 * 2**20, max(vmem_est + (8 << 20), 16 * 2**20)))

    spk_pad = pl.pallas_call(
        kernel,
        out_shape=jax.ShapeDtypeStruct((B, t_pad, out_pad), jnp.float32),
        grid_spec=pltpu.PrefetchScalarGridSpec(
            num_scalar_prefetch=0,
            grid=(n_tiles,),
            in_specs=[
                # x rows for this time tile
                pl.BlockSpec((tile_t * B, in_dim), lambda i: (i, 0)),
                # resident weights (constant index_map -> fetched once)
                pl.BlockSpec((in_dim, out_pad), lambda i: (0, 0)),
                pl.BlockSpec((out_pad, out_pad), lambda i: (0, 0)),
            ],
            # batch-major output so no post-kernel HBM transpose is needed
            out_specs=pl.BlockSpec((B, tile_t, out_pad), lambda i: (0, i, 0)),
            scratch_shapes=[
                pltpu.VMEM((tile_t * B, out_pad), jnp.float32),  # h1 projection
                pltpu.VMEM((3, B, out_pad), jnp.float32),        # syn/mem/spk
            ],
        ),
        compiler_params=pltpu.CompilerParams(
            # time tiles are a sequential recurrence
            dimension_semantics=("arbitrary",),
            vmem_limit_bytes=vmem_limit,
        ),
    )(x_2d, w, r)

    # Remove time / lane padding (single fused slice pass).
    spk_rec = spk_pad[:, :T, :out_dim]

    # aout_idx: indices of active (spiking) outputs, mirroring torch .nonzero().
    if nonzero_size is None:
        # exact torch semantics (dynamic shape, computed outside the kernel)
        aout_idx = jnp.stack(jnp.nonzero(spk_rec), axis=1)   # (n_spikes, 3)
    else:
        # static-size, jit-friendly alternative (rows of -1 pad the buffer)
        aout_idx = jnp.argwhere(spk_rec, size=nonzero_size, fill_value=-1)
    return spk_rec, aout_idx


def init_params(key, in_dim, nb_hidden, out_dim, recurrent_mode="fr"):
    kw, kr = jax.random.split(key)
    # xavier_uniform_ for dweight_w
    limit = (6.0 / (in_dim + out_dim)) ** 0.5
    dweight_w = jax.random.uniform(kw, (in_dim, out_dim), jnp.float32,
                                   minval=-limit, maxval=limit)
    if recurrent_mode == "fr":
        dweight_r = jax.nn.initializers.orthogonal()(kr, (nb_hidden, out_dim),
                                                     jnp.float32)
    elif recurrent_mode == "sr":
        dweight_r = jnp.eye(nb_hidden, out_dim, dtype=jnp.float32)
    else:
        raise ValueError("recurrent_mode must be 'fr' or 'sr'")
    return dweight_w, dweight_r


if __name__ == "__main__":
    B, T, in_dim = 8, 16, 40
    nb_hidden = out_dim = 32

    args = {"alpha": 0.9, "beta": 0.85, "thr": 0.5, "recurrent_mode": "fr"}

    key = jax.random.PRNGKey(0)
    kx, kp = jax.random.split(key)
    x = jax.random.normal(kx, (B, T, in_dim), jnp.float32)

    dweight_w, dweight_r = init_params(kp, in_dim, nb_hidden, out_dim,
                                       args["recurrent_mode"])

    # tile_t = T -> a single grid step at this toy size (per perf review).
    spk_rec, aout_idx = srnn_dense2sparse_forward(x, dweight_w, dweight_r, args,
                                                  tile_t=T)
    jax.block_until_ready(spk_rec)
    jax.block_until_ready(aout_idx)

    assert spk_rec.shape == (B, T, out_dim)
    assert aout_idx.ndim == 2 and aout_idx.shape[1] == 3
    assert bool(jnp.all((spk_rec == 0.0) | (spk_rec == 1.0)))
    print("KERNEL_OK")
</pallas_src>

<mosaic_0001>
module attributes {stable_mosaic.version = 11 : i64} {
  func.func @_srnn_kernel(%arg0: i32, %arg1: memref<128x40xf32, #tpu.memory_space<vmem>>, %arg2: memref<40x128xbf16, #tpu.memory_space<vmem>>, %arg3: memref<128x128xbf16, #tpu.memory_space<vmem>>, %arg4: memref<8x16x128xf32, #tpu.memory_space<vmem>>, %arg5: memref<128x128xf32, #tpu.memory_space<vmem>>, %arg6: memref<3x8x128xf32, #tpu.memory_space<vmem>>) attributes {dimension_semantics = [#tpu.dimension_semantics<arbitrary>], iteration_bounds = array<i64: 1>, scalar_prefetch = 0 : i64, scratch_operands = 2 : i64, tpu.core_type = #tpu.core_type<tc>, window_params = [{transform_indices = @transform_0, window_bounds = array<i64: 128, 40>}, {pipeline_mode = #tpu.pipeline_mode<synchronous>, transform_indices = @transform_1, window_bounds = array<i64: 40, 128>}, {pipeline_mode = #tpu.pipeline_mode<synchronous>, transform_indices = @transform_2, window_bounds = array<i64: 128, 128>}, {transform_indices = @transform_3, window_bounds = array<i64: 8, 16, 128>}]} {
    %c0_i32 = arith.constant 0 : i32
    %0 = arith.cmpi eq, %arg0, %c0_i32 : i32
    %1 = arith.extui %0 : i1 to i32
    %c0_i32_0 = arith.constant 0 : i32
    %2 = arith.cmpi ne, %1, %c0_i32_0 : i32
    scf.if %2 {
      %cst_173 = arith.constant 0.000000e+00 : f32
      %376 = vector.broadcast %cst_173 : f32 to vector<3x8x128xf32>
      %c0_174 = arith.constant 0 : index
      %c0_175 = arith.constant 0 : index
      %c0_176 = arith.constant 0 : index
      %377 = vector.load %arg6[%c0_174, %c0_175, %c0_176] : memref<3x8x128xf32, #tpu.memory_space<vmem>>, vector<3x8x128xf32>
      tpu.vector_store %arg6[%c0_174, %c0_175, %c0_176], %376 {strides = array<i32>} : memref<3x8x128xf32, #tpu.memory_space<vmem>>, vector<3x8x128xf32>,
    } else {
    }
    %c0 = arith.constant 0 : index
    %c0_1 = arith.constant 0 : index
    %3 = vector.load %arg1[%c0, %c0_1] : memref<128x40xf32, #tpu.memory_space<vmem>>, vector<128x40xf32>
    %4 = arith.truncf %3 : vector<128x40xf32> to vector<128x40xbf16>
    %c0_2 = arith.constant 0 : index
    %c0_3 = arith.constant 0 : index
    %5 = vector.load %arg2[%c0_2, %c0_3] : memref<40x128xbf16, #tpu.memory_space<vmem>>, vector<40x128xbf16>
    %cst = arith.constant dense<0.000000e+00> : vector<128x128xf32>
    %6 = tpu.matmul %4, %5, %cst {dimension_numbers = #tpu.dot_dimension_numbers<[1], [0], [0], [1], [0, 0, 1, 1], [], []>} : vector<128x40xbf16>, vector<40x128xbf16>, vector<128x128xf32> -> vector<128x128xf32>
    %c0_4 = arith.constant 0 : index
    %c0_5 = arith.constant 0 : index
    %7 = vector.load %arg5[%c0_4, %c0_5] : memref<128x128xf32, #tpu.memory_space<vmem>>, vector<128x128xf32>
    tpu.vector_store %arg5[%c0_4, %c0_5], %6 {strides = array<i32>} : memref<128x128xf32, #tpu.memory_space<vmem>>, vector<128x128xf32>,
    %c0_6 = arith.constant 0 : index
    %c0_7 = arith.constant 0 : index
    %8 = vector.load %arg3[%c0_6, %c0_7] : memref<128x128xbf16, #tpu.memory_space<vmem>>, vector<128x128xbf16>
    %c0_8 = arith.constant 0 : index
    %c0_9 = arith.constant 0 : index
    %c0_10 = arith.constant 0 : index
    %9 = vector.load %arg6[%c0_8, %c0_9, %c0_10] : memref<3x8x128xf32, #tpu.memory_space<vmem>>, vector<1x8x128xf32>
    %10 = vector.shape_cast %9 : vector<1x8x128xf32> to vector<8x128xf32>
    %c1 = arith.constant 1 : index
    %c0_11 = arith.constant 0 : index
    %c0_12 = arith.constant 0 : index
    %11 = vector.load %arg6[%c1, %c0_11, %c0_12] : memref<3x8x128xf32, #tpu.memory_space<vmem>>, vector<1x8x128xf32>
    %12 = vector.shape_cast %11 : vector<1x8x128xf32> to vector<8x128xf32>
    %c2 = arith.constant 2 : index
    %c0_13 = arith.constant 0 : index
    %c0_14 = arith.constant 0 : index
    %13 = vector.load %arg6[%c2, %c0_13, %c0_14] : memref<3x8x128xf32, #tpu.memory_space<vmem>>, vector<1x8x128xf32>
    %14 = vector.shape_cast %13 : vector<1x8x128xf32> to vector<8x128xf32>
    %c0_15 = arith.constant 0 : index
    %c0_16 = arith.constant 0 : index
    %15 = vector.load %arg5[%c0_15, %c0_16] : memref<128x128xf32, #tpu.memory_space<vmem>>, vector<8x128xf32>
    %16 = arith.truncf %14 : vector<8x128xf32> to vector<8x128xbf16>
    %cst_17 = arith.constant dense<0.000000e+00> : vector<8x128xf32>
    %17 = tpu.matmul %16, %8, %cst_17 {dimension_numbers = #tpu.dot_dimension_numbers<[1], [0], [0], [1], [0, 0, 1, 1], [], []>} : vector<8x128xbf16>, vector<128x128xbf16>, vector<8x128xf32> -> vector<8x128xf32>
    %18 = arith.addf %15, %17 : vector<8x128xf32>
    %cst_18 = arith.constant 5.000000e-01 : f32
    %19 = vector.broadcast %cst_18 : f32 to vector<8x128xf32>
    %20 = arith.subf %12, %19 : vector<8x128xf32>
    %cst_19 = arith.constant 0.000000e+00 : f32
    %21 = vector.broadcast %cst_19 : f32 to vector<8x128xf32>
    %22 = arith.cmpf ogt, %20, %21 : vector<8x128xf32>
    %23 = arith.extui %22 : vector<8x128xi1> to vector<8x128xi32>
    %24 = arith.sitofp %23 : vector<8x128xi32> to vector<8x128xf32>
    %cst_20 = arith.constant 0.899999976 : f32
    %25 = vector.broadcast %cst_20 : f32 to vector<8x128xf32>
    %26 = arith.mulf %25, %10 : vector<8x128xf32>
    %27 = arith.addf %26, %18 : vector<8x128xf32>
    %cst_21 = arith.constant 8.500000e-01 : f32
    %28 = vector.broadcast %cst_21 : f32 to vector<8x128xf32>
    %29 = arith.mulf %28, %12 : vector<8x128xf32>
    %30 = arith.addf %29, %10 : vector<8x128xf32>
    %cst_22 = arith.constant 1.000000e+00 : f32
    %31 = vector.broadcast %cst_22 : f32 to vector<8x128xf32>
    %32 = arith.subf %31, %24 : vector<8x128xf32>
    %33 = arith.mulf %30, %32 : vector<8x128xf32>
    %c0_23 = arith.constant 0 : index
    %c0_24 = arith.constant 0 : index
    %c0_25 = arith.constant 0 : index
    %34 = vector.load %arg4[%c0_23, %c0_24, %c0_25] : memref<8x16x128xf32, #tpu.memory_space<vmem>>, vector<8x1x128xf32>
    %35 = vector.shape_cast %34 : vector<8x1x128xf32> to vector<8x128xf32>
    %36 = vector.shape_cast %24 : vector<8x128xf32> to vector<8x1x128xf32>
    tpu.vector_store %arg4[%c0_23, %c0_24, %c0_25], %36 {strides = array<i32>} : memref<8x16x128xf32, #tpu.memory_space<vmem>>, vector<8x1x128xf32>,
    %c8 = arith.constant 8 : index
    %c0_26 = arith.constant 0 : index
    %37 = vector.load %arg5[%c8, %c0_26] : memref<128x128xf32, #tpu.memory_space<vmem>>, vector<8x128xf32>
    %38 = arith.truncf %24 : vector<8x128xf32> to vector<8x128xbf16>
    %cst_27 = arith.constant dense<0.000000e+00> : vector<8x128xf32>
    %39 = tpu.matmul %38, %8, %cst_27 {dimension_numbers = #tpu.dot_dimension_numbers<[1], [0], [0], [1], [0, 0, 1, 1], [], []>} : vector<8x128xbf16>, vector<128x128xbf16>, vector<8x128xf32> -> vector<8x128xf32>
    %40 = arith.addf %37, %39 : vector<8x128xf32>
    %cst_28 = arith.constant 5.000000e-01 : f32
    %41 = vector.broadcast %cst_28 : f32 to vector<8x128xf32>
    %42 = arith.subf %33, %41 : vector<8x128xf32>
    %cst_29 = arith.constant 0.000000e+00 : f32
    %43 = vector.broadcast %cst_29 : f32 to vector<8x128xf32>
    %44 = arith.cmpf ogt, %42, %43 : vector<8x128xf32>
    %45 = arith.extui %44 : vector<8x128xi1> to vector<8x128xi32>
    %46 = arith.sitofp %45 : vector<8x128xi32> to vector<8x128xf32>
    %cst_30 = arith.constant 0.899999976 : f32
    %47 = vector.broadcast %cst_30 : f32 to vector<8x128xf32>
    %48 = arith.mulf %47, %27 : vector<8x128xf32>
    %49 = arith.addf %48, %40 : vector<8x128xf32>
    %cst_31 = arith.constant 8.500000e-01 : f32
    %50 = vector.broadcast %cst_31 : f32 to vector<8x128xf32>
    %51 = arith.mulf %50, %33 : vector<8x128xf32>
    %52 = arith.addf %51, %27 : vector<8x128xf32>
    %cst_32 = arith.constant 1.000000e+00 : f32
    %53 = vector.broadcast %cst_32 : f32 to vector<8x128xf32>
    %54 = arith.subf %53, %46 : vector<8x128xf32>
    %55 = arith.mulf %52, %54 : vector<8x128xf32>
    %c0_33 = arith.constant 0 : index
    %c1_34 = arith.constant 1 : index
    %c0_35 = arith.constant 0 : index
    %56 = vector.load %arg4[%c0_33, %c1_34, %c0_35] : memref<8x16x128xf32, #tpu.memory_space<vmem>>, vector<8x1x128xf32>
    %57 = vector.shape_cast %56 : vector<8x1x128xf32> to vector<8x128xf32>
    %58 = vector.shape_cast %46 : vector<8x128xf32> to vector<8x1x128xf32>
    tpu.vector_store %arg4[%c0_33, %c1_34, %c0_35], %58 {strides = array<i32>} : memref<8x16x128xf32, #tpu.memory_space<vmem>>, vector<8x1x128xf32>,
    %c16 = arith.constant 16 : index
    %c0_36 = arith.constant 0 : index
    %59 = vector.load %arg5[%c16, %c0_36] : memref<128x128xf32, #tpu.memory_space<vmem>>, vector<8x128xf32>
    %60 = arith.truncf %46 : vector<8x128xf32> to vector<8x128xbf16>
    %cst_37 = arith.constant dense<0.000000e+00> : vector<8x128xf32>
    %61 = tpu.matmul %60, %8, %cst_37 {dimension_numbers = #tpu.dot_dimension_numbers<[1], [0], [0], [1], [0, 0, 1, 1], [], []>} : vector<8x128xbf16>, vector<128x128xbf16>, vector<8x128xf32> -> vector<8x128xf32>
    %62 = arith.addf %59, %61 : vector<8x128xf32>
    %cst_38 = arith.constant 5.000000e-01 : f32
    %63 = vector.broadcast %cst_38 : f32 to vector<8x128xf32>
    %64 = arith.subf %55, %63 : vector<8x128xf32>
    %cst_39 = arith.constant 0.000000e+00 : f32
    %65 = vector.broadcast %cst_39 : f32 to vector<8x128xf32>
    %66 = arith.cmpf ogt, %64, %65 : vector<8x128xf32>
    %67 = arith.extui %66 : vector<8x128xi1> to vector<8x128xi32>
    %68 = arith.sitofp %67 : vector<8x128xi32> to vector<8x128xf32>
    %cst_40 = arith.constant 0.899999976 : f32
    %69 = vector.broadcast %cst_40 : f32 to vector<8x128xf32>
    %70 = arith.mulf %69, %49 : vector<8x128xf32>
    %71 = arith.addf %70, %62 : vector<8x128xf32>
    %cst_41 = arith.constant 8.500000e-01 : f32
    %72 = vector.broadcast %cst_41 : f32 to vector<8x128xf32>
    %73 = arith.mulf %72, %55 : vector<8x128xf32>
    %74 = arith.addf %73, %49 : vector<8x128xf32>
    %cst_42 = arith.constant 1.000000e+00 : f32
    %75 = vector.broadcast %cst_42 : f32 to vector<8x128xf32>
    %76 = arith.subf %75, %68 : vector<8x128xf32>
    %77 = arith.mulf %74, %76 : vector<8x128xf32>
    %c0_43 = arith.constant 0 : index
    %c2_44 = arith.constant 2 : index
    %c0_45 = arith.constant 0 : index
    %78 = vector.load %arg4[%c0_43, %c2_44, %c0_45] : memref<8x16x128xf32, #tpu.memory_space<vmem>>, vector<8x1x128xf32>
    %79 = vector.shape_cast %78 : vector<8x1x128xf32> to vector<8x128xf32>
    %80 = vector.shape_cast %68 : vector<8x128xf32> to vector<8x1x128xf32>
    tpu.vector_store %arg4[%c0_43, %c2_44, %c0_45], %80 {strides = array<i32>} : memref<8x16x128xf32, #tpu.memory_space<vmem>>, vector<8x1x128xf32>,
    %c24 = arith.constant 24 : index
    %c0_46 = arith.constant 0 : index
    %81 = vector.load %arg5[%c24, %c0_46] : memref<128x128xf32, #tpu.memory_space<vmem>>, vector<8x128xf32>
    %82 = arith.truncf %68 : vector<8x128xf32> to vector<8x128xbf16>
    %cst_47 = arith.constant dense<0.000000e+00> : vector<8x128xf32>
    %83 = tpu.matmul %82, %8, %cst_47 {dimension_numbers = #tpu.dot_dimension_numbers<[1], [0], [0], [1], [0, 0, 1, 1], [], []>} : vector<8x128xbf16>, vector<128x128xbf16>, vector<8x128xf32> -> vector<8x128xf32>
    %84 = arith.addf %81, %83 : vector<8x128xf32>
    %cst_48 = arith.constant 5.000000e-01 : f32
    %85 = vector.broadcast %cst_48 : f32 to vector<8x128xf32>
    %86 = arith.subf %77, %85 : vector<8x128xf32>
    %cst_49 = arith.constant 0.000000e+00 : f32
    %87 = vector.broadcast %cst_49 : f32 to vector<8x128xf32>
    %88 = arith.cmpf ogt, %86, %87 : vector<8x128xf32>
    %89 = arith.extui %88 : vector<8x128xi1> to vector<8x128xi32>
    %90 = arith.sitofp %89 : vector<8x128xi32> to vector<8x128xf32>
    %cst_50 = arith.constant 0.899999976 : f32
    %91 = vector.broadcast %cst_50 : f32 to vector<8x128xf32>
    %92 = arith.mulf %91, %71 : vector<8x128xf32>
    %93 = arith.addf %92, %84 : vector<8x128xf32>
    %cst_51 = arith.constant 8.500000e-01 : f32
    %94 = vector.broadcast %cst_51 : f32 to vector<8x128xf32>
    %95 = arith.mulf %94, %77 : vector<8x128xf32>
    %96 = arith.addf %95, %71 : vector<8x128xf32>
    %cst_52 = arith.constant 1.000000e+00 : f32
    %97 = vector.broadcast %cst_52 : f32 to vector<8x128xf32>
    %98 = arith.subf %97, %90 : vector<8x128xf32>
    %99 = arith.mulf %96, %98 : vector<8x128xf32>
    %c0_53 = arith.constant 0 : index
    %c3 = arith.constant 3 : index
    %c0_54 = arith.constant 0 : index
    %100 = vector.load %arg4[%c0_53, %c3, %c0_54] : memref<8x16x128xf32, #tpu.memory_space<vmem>>, vector<8x1x128xf32>
    %101 = vector.shape_cast %100 : vector<8x1x128xf32> to vector<8x128xf32>
    %102 = vector.shape_cast %90 : vector<8x128xf32> to vector<8x1x128xf32>
    tpu.vector_store %arg4[%c0_53, %c3, %c0_54], %102 {strides = array<i32>} : memref<8x16x128xf32, #tpu.memory_space<vmem>>, vector<8x1x128xf32>,
    %c32 = arith.constant 32 : index
    %c0_55 = arith.constant 0 : index
    %103 = vector.load %arg5[%c32, %c0_55] : memref<128x128xf32, #tpu.memory_space<vmem>>, vector<8x128xf32>
    %104 = arith.truncf %90 : vector<8x128xf32> to vector<8x128xbf16>
    %cst_56 = arith.constant dense<0.000000e+00> : vector<8x128xf32>
    %105 = tpu.matmul %104, %8, %cst_56 {dimension_numbers = #tpu.dot_dimension_numbers<[1], [0], [0], [1], [0, 0, 1, 1], [], []>} : vector<8x128xbf16>, vector<128x128xbf16>, vector<8x128xf32> -> vector<8x128xf32>
    %106 = arith.addf %103, %105 : vector<8x128xf32>
    %cst_57 = arith.constant 5.000000e-01 : f32
    %107 = vector.broadcast %cst_57 : f32 to vector<8x128xf32>
    %108 = arith.subf %99, %107 : vector<8x128xf32>
    %cst_58 = arith.constant 0.000000e+00 : f32
    %109 = vector.broadcast %cst_58 : f32 to vector<8x128xf32>
    %110 = arith.cmpf ogt, %108, %109 : vector<8x128xf32>
    %111 = arith.extui %110 : vector<8x128xi1> to vector<8x128xi32>
    %112 = arith.sitofp %111 : vector<8x128xi32> to vector<8x128xf32>
    %cst_59 = arith.constant 0.899999976 : f32
    %113 = vector.broadcast %cst_59 : f32 to vector<8x128xf32>
    %114 = arith.mulf %113, %93 : vector<8x128xf32>
    %115 = arith.addf %114, %106 : vector<8x128xf32>
    %cst_60 = arith.constant 8.500000e-01 : f32
    %116 = vector.broadcast %cst_60 : f32 to vector<8x128xf32>
    %117 = arith.mulf %116, %99 : vector<8x128xf32>
    %118 = arith.addf %117, %93 : vector<8x128xf32>
    %cst_61 = arith.constant 1.000000e+00 : f32
    %119 = vector.broadcast %cst_61 : f32 to vector<8x128xf32>
    %120 = arith.subf %119, %112 : vector<8x128xf32>
    %121 = arith.mulf %118, %120 : vector<8x128xf32>
    %c0_62 = arith.constant 0 : index
    %c4 = arith.constant 4 : index
    %c0_63 = arith.constant 0 : index
    %122 = vector.load %arg4[%c0_62, %c4, %c0_63] : memref<8x16x128xf32, #tpu.memory_space<vmem>>, vector<8x1x128xf32>
    %123 = vector.shape_cast %122 : vector<8x1x128xf32> to vector<8x128xf32>
    %124 = vector.shape_cast %112 : vector<8x128xf32> to vector<8x1x128xf32>
    tpu.vector_store %arg4[%c0_62, %c4, %c0_63], %124 {strides = array<i32>} : memref<8x16x128xf32, #tpu.memory_space<vmem>>, vector<8x1x128xf32>,
    %c40 = arith.constant 40 : index
    %c0_64 = arith.constant 0 : index
    %125 = vector.load %arg5[%c40, %c0_64] : memref<128x128xf32, #tpu.memory_space<vmem>>, vector<8x128xf32>
    %126 = arith.truncf %112 : vector<8x128xf32> to vector<8x128xbf16>
    %cst_65 = arith.constant dense<0.000000e+00> : vector<8x128xf32>
    %127 = tpu.matmul %126, %8, %cst_65 {dimension_numbers = #tpu.dot_dimension_numbers<[1], [0], [0], [1], [0, 0, 1, 1], [], []>} : vector<8x128xbf16>, vector<128x128xbf16>, vector<8x128xf32> -> vector<8x128xf32>
    %128 = arith.addf %125, %127 : vector<8x128xf32>
    %cst_66 = arith.constant 5.000000e-01 : f32
    %129 = vector.broadcast %cst_66 : f32 to vector<8x128xf32>
    %130 = arith.subf %121, %129 : vector<8x128xf32>
    %cst_67 = arith.constant 0.000000e+00 : f32
    %131 = vector.broadcast %cst_67 : f32 to vector<8x128xf32>
    %132 = arith.cmpf ogt, %130, %131 : vector<8x128xf32>
    %133 = arith.extui %132 : vector<8x128xi1> to vector<8x128xi32>
    %134 = arith.sitofp %133 : vector<8x128xi32> to vector<8x128xf32>
    %cst_68 = arith.constant 0.899999976 : f32
    %135 = vector.broadcast %cst_68 : f32 to vector<8x128xf32>
    %136 = arith.mulf %135, %115 : vector<8x128xf32>
    %137 = arith.addf %136, %128 : vector<8x128xf32>
    %cst_69 = arith.constant 8.500000e-01 : f32
    %138 = vector.broadcast %cst_69 : f32 to vector<8x128xf32>
    %139 = arith.mulf %138, %121 : vector<8x128xf32>
    %140 = arith.addf %139, %115 : vector<8x128xf32>
    %cst_70 = arith.constant 1.000000e+00 : f32
    %141 = vector.broadcast %cst_70 : f32 to vector<8x128xf32>
    %142 = arith.subf %141, %134 : vector<8x128xf32>
    %143 = arith.mulf %140, %142 : vector<8x128xf32>
    %c0_71 = arith.constant 0 : index
    %c5 = arith.constant 5 : index
    %c0_72 = arith.constant 0 : index
    %144 = vector.load %arg4[%c0_71, %c5, %c0_72] : memref<8x16x128xf32, #tpu.memory_space<vmem>>, vector<8x1x128xf32>
    %145 = vector.shape_cast %144 : vector<8x1x128xf32> to vector<8x128xf32>
    %146 = vector.shape_cast %134 : vector<8x128xf32> to vector<8x1x128xf32>
    tpu.vector_store %arg4[%c0_71, %c5, %c0_72], %146 {strides = array<i32>} : memref<8x16x128xf32, #tpu.memory_space<vmem>>, vector<8x1x128xf32>,
    %c48 = arith.constant 48 : index
    %c0_73 = arith.constant 0 : index
    %147 = vector.load %arg5[%c48, %c0_73] : memref<128x128xf32, #tpu.memory_space<vmem>>, vector<8x128xf32>
    %148 = arith.truncf %134 : vector<8x128xf32> to vector<8x128xbf16>
    %cst_74 = arith.constant dense<0.000000e+00> : vector<8x128xf32>
    %149 = tpu.matmul %148, %8, %cst_74 {dimension_numbers = #tpu.dot_dimension_numbers<[1], [0], [0], [1], [0, 0, 1, 1], [], []>} : vector<8x128xbf16>, vector<128x128xbf16>, vector<8x128xf32> -> vector<8x128xf32>
    %150 = arith.addf %147, %149 : vector<8x128xf32>
    %cst_75 = arith.constant 5.000000e-01 : f32
    %151 = vector.broadcast %cst_75 : f32 to vector<8x128xf32>
    %152 = arith.subf %143, %151 : vector<8x128xf32>
    %cst_76 = arith.constant 0.000000e+00 : f32
    %153 = vector.broadcast %cst_76 : f32 to vector<8x128xf32>
    %154 = arith.cmpf ogt, %152, %153 : vector<8x128xf32>
    %155 = arith.extui %154 : vector<8x128xi1> to vector<8x128xi32>
    %156 = arith.sitofp %155 : vector<8x128xi32> to vector<8x128xf32>
    %cst_77 = arith.constant 0.899999976 : f32
    %157 = vector.broadcast %cst_77 : f32 to vector<8x128xf32>
    %158 = arith.mulf %157, %137 : vector<8x128xf32>
    %159 = arith.addf %158, %150 : vector<8x128xf32>
    %cst_78 = arith.constant 8.500000e-01 : f32
    %160 = vector.broadcast %cst_78 : f32 to vector<8x128xf32>
    %161 = arith.mulf %160, %143 : vector<8x128xf32>
    %162 = arith.addf %161, %137 : vector<8x128xf32>
    %cst_79 = arith.constant 1.000000e+00 : f32
    %163 = vector.broadcast %cst_79 : f32 to vector<8x128xf32>
    %164 = arith.subf %163, %156 : vector<8x128xf32>
    %165 = arith.mulf %162, %164 : vector<8x128xf32>
    %c0_80 = arith.constant 0 : index
    %c6 = arith.constant 6 : index
    %c0_81 = arith.constant 0 : index
    %166 = vector.load %arg4[%c0_80, %c6, %c0_81] : memref<8x16x128xf32, #tpu.memory_space<vmem>>, vector<8x1x128xf32>
    %167 = vector.shape_cast %166 : vector<8x1x128xf32> to vector<8x128xf32>
    %168 = vector.shape_cast %156 : vector<8x128xf32> to vector<8x1x128xf32>
    tpu.vector_store %arg4[%c0_80, %c6, %c0_81], %168 {strides = array<i32>} : memref<8x16x128xf32, #tpu.memory_space<vmem>>, vector<8x1x128xf32>,
    %c56 = arith.constant 56 : index
    %c0_82 = arith.constant 0 : index
    %169 = vector.load %arg5[%c56, %c0_82] : memref<128x128xf32, #tpu.memory_space<vmem>>, vector<8x128xf32>
    %170 = arith.truncf %156 : vector<8x128xf32> to vector<8x128xbf16>
    %cst_83 = arith.constant dense<0.000000e+00> : vector<8x128xf32>
    %171 = tpu.matmul %170, %8, %cst_83 {dimension_numbers = #tpu.dot_dimension_numbers<[1], [0], [0], [1], [0, 0, 1, 1], [], []>} : vector<8x128xbf16>, vector<128x128xbf16>, vector<8x128xf32> -> vector<8x128xf32>
    %172 = arith.addf %169, %171 : vector<8x128xf32>
    %cst_84 = arith.constant 5.000000e-01 : f32
    %173 = vector.broadcast %cst_84 : f32 to vector<8x128xf32>
    %174 = arith.subf %165, %173 : vector<8x128xf32>
    %cst_85 = arith.constant 0.000000e+00 : f32
    %175 = vector.broadcast %cst_85 : f32 to vector<8x128xf32>
    %176 = arith.cmpf ogt, %174, %175 : vector<8x128xf32>
    %177 = arith.extui %176 : vector<8x128xi1> to vector<8x128xi32>
    %178 = arith.sitofp %177 : vector<8x128xi32> to vector<8x128xf32>
    %cst_86 = arith.constant 0.899999976 : f32
    %179 = vector.broadcast %cst_86 : f32 to vector<8x128xf32>
    %180 = arith.mulf %179, %159 : vector<8x128xf32>
    %181 = arith.addf %180, %172 : vector<8x128xf32>
    %cst_87 = arith.constant 8.500000e-01 : f32
    %182 = vector.broadcast %cst_87 : f32 to vector<8x128xf32>
    %183 = arith.mulf %182, %165 : vector<8x128xf32>
    %184 = arith.addf %183, %159 : vector<8x128xf32>
    %cst_88 = arith.constant 1.000000e+00 : f32
    %185 = vector.broadcast %cst_88 : f32 to vector<8x128xf32>
    %186 = arith.subf %185, %178 : vector<8x128xf32>
    %187 = arith.mulf %184, %186 : vector<8x128xf32>
    %c0_89 = arith.constant 0 : index
    %c7 = arith.constant 7 : index
    %c0_90 = arith.constant 0 : index
    %188 = vector.load %arg4[%c0_89, %c7, %c0_90] : memref<8x16x128xf32, #tpu.memory_space<vmem>>, vector<8x1x128xf32>
    %189 = vector.shape_cast %188 : vector<8x1x128xf32> to vector<8x128xf32>
    %190 = vector.shape_cast %178 : vector<8x128xf32> to vector<8x1x128xf32>
    tpu.vector_store %arg4[%c0_89, %c7, %c0_90], %190 {strides = array<i32>} : memref<8x16x128xf32, #tpu.memory_space<vmem>>, vector<8x1x128xf32>,
    %c64 = arith.constant 64 : index
    %c0_91 = arith.constant 0 : index
    %191 = vector.load %arg5[%c64, %c0_91] : memref<128x128xf32, #tpu.memory_space<vmem>>, vector<8x128xf32>
    %192 = arith.truncf %178 : vector<8x128xf32> to vector<8x128xbf16>
    %cst_92 = arith.constant dense<0.000000e+00> : vector<8x128xf32>
    %193 = tpu.matmul %192, %8, %cst_92 {dimension_numbers = #tpu.dot_dimension_numbers<[1], [0], [0], [1], [0, 0, 1, 1], [], []>} : vector<8x128xbf16>, vector<128x128xbf16>, vector<8x128xf32> -> vector<8x128xf32>
    %194 = arith.addf %191, %193 : vector<8x128xf32>
    %cst_93 = arith.constant 5.000000e-01 : f32
    %195 = vector.broadcast %cst_93 : f32 to vector<8x128xf32>
    %196 = arith.subf %187, %195 : vector<8x128xf32>
    %cst_94 = arith.constant 0.000000e+00 : f32
    %197 = vector.broadcast %cst_94 : f32 to vector<8x128xf32>
    %198 = arith.cmpf ogt, %196, %197 : vector<8x128xf32>
    %199 = arith.extui %198 : vector<8x128xi1> to vector<8x128xi32>
    %200 = arith.sitofp %199 : vector<8x128xi32> to vector<8x128xf32>
    %cst_95 = arith.constant 0.899999976 : f32
    %201 = vector.broadcast %cst_95 : f32 to vector<8x128xf32>
    %202 = arith.mulf %201, %181 : vector<8x128xf32>
    %203 = arith.addf %202, %194 : vector<8x128xf32>
    %cst_96 = arith.constant 8.500000e-01 : f32
    %204 = vector.broadcast %cst_96 : f32 to vector<8x128xf32>
    %205 = arith.mulf %204, %187 : vector<8x128xf32>
    %206 = arith.addf %205, %181 : vector<8x128xf32>
    %cst_97 = arith.constant 1.000000e+00 : f32
    %207 = vector.broadcast %cst_97 : f32 to vector<8x128xf32>
    %208 = arith.subf %207, %200 : vector<8x128xf32>
    %209 = arith.mulf %206, %208 : vector<8x128xf32>
    %c0_98 = arith.constant 0 : index
    %c8_99 = arith.constant 8 : index
    %c0_100 = arith.constant 0 : index
    %210 = vector.load %arg4[%c0_98, %c8_99, %c0_100] : memref<8x16x128xf32, #tpu.memory_space<vmem>>, vector<8x1x128xf32>
    %211 = vector.shape_cast %210 : vector<8x1x128xf32> to vector<8x128xf32>
    %212 = vector.shape_cast %200 : vector<8x128xf32> to vector<8x1x128xf32>
    tpu.vector_store %arg4[%c0_98, %c8_99, %c0_100], %212 {strides = array<i32>} : memref<8x16x128xf32, #tpu.memory_space<vmem>>, vector<8x1x128xf32>,
    %c72 = arith.constant 72 : index
    %c0_101 = arith.constant 0 : index
    %213 = vector.load %arg5[%c72, %c0_101] : memref<128x128xf32, #tpu.memory_space<vmem>>, vector<8x128xf32>
    %214 = arith.truncf %200 : vector<8x128xf32> to vector<8x128xbf16>
    %cst_102 = arith.constant dense<0.000000e+00> : vector<8x128xf32>
    %215 = tpu.matmul %214, %8, %cst_102 {dimension_numbers = #tpu.dot_dimension_numbers<[1], [0], [0], [1], [0, 0, 1, 1], [], []>} : vector<8x128xbf16>, vector<128x128xbf16>, vector<8x128xf32> -> vector<8x128xf32>
    %216 = arith.addf %213, %215 : vector<8x128xf32>
    %cst_103 = arith.constant 5.000000e-01 : f32
    %217 = vector.broadcast %cst_103 : f32 to vector<8x128xf32>
    %218 = arith.subf %209, %217 : vector<8x128xf32>
    %cst_104 = arith.constant 0.000000e+00 : f32
    %219 = vector.broadcast %cst_104 : f32 to vector<8x128xf32>
    %220 = arith.cmpf ogt, %218, %219 : vector<8x128xf32>
    %221 = arith.extui %220 : vector<8x128xi1> to vector<8x128xi32>
    %222 = arith.sitofp %221 : vector<8x128xi32> to vector<8x128xf32>
    %cst_105 = arith.constant 0.899999976 : f32
    %223 = vector.broadcast %cst_105 : f32 to vector<8x128xf32>
    %224 = arith.mulf %223, %203 : vector<8x128xf32>
    %225 = arith.addf %224, %216 : vector<8x128xf32>
    %cst_106 = arith.constant 8.500000e-01 : f32
    %226 = vector.broadcast %cst_106 : f32 to vector<8x128xf32>
    %227 = arith.mulf %226, %209 : vector<8x128xf32>
    %228 = arith.addf %227, %203 : vector<8x128xf32>
    %cst_107 = arith.constant 1.000000e+00 : f32
    %229 = vector.broadcast %cst_107 : f32 to vector<8x128xf32>
    %230 = arith.subf %229, %222 : vector<8x128xf32>
    %231 = arith.mulf %228, %230 : vector<8x128xf32>
    %c0_108 = arith.constant 0 : index
    %c9 = arith.constant 9 : index
    %c0_109 = arith.constant 0 : index
    %232 = vector.load %arg4[%c0_108, %c9, %c0_109] : memref<8x16x128xf32, #tpu.memory_space<vmem>>, vector<8x1x128xf32>
    %233 = vector.shape_cast %232 : vector<8x1x128xf32> to vector<8x128xf32>
    %234 = vector.shape_cast %222 : vector<8x128xf32> to vector<8x1x128xf32>
    tpu.vector_store %arg4[%c0_108, %c9, %c0_109], %234 {strides = array<i32>} : memref<8x16x128xf32, #tpu.memory_space<vmem>>, vector<8x1x128xf32>,
    %c80 = arith.constant 80 : index
    %c0_110 = arith.constant 0 : index
    %235 = vector.load %arg5[%c80, %c0_110] : memref<128x128xf32, #tpu.memory_space<vmem>>, vector<8x128xf32>
    %236 = arith.truncf %222 : vector<8x128xf32> to vector<8x128xbf16>
    %cst_111 = arith.constant dense<0.000000e+00> : vector<8x128xf32>
    %237 = tpu.matmul %236, %8, %cst_111 {dimension_numbers = #tpu.dot_dimension_numbers<[1], [0], [0], [1], [0, 0, 1, 1], [], []>} : vector<8x128xbf16>, vector<128x128xbf16>, vector<8x128xf32> -> vector<8x128xf32>
    %238 = arith.addf %235, %237 : vector<8x128xf32>
    %cst_112 = arith.constant 5.000000e-01 : f32
    %239 = vector.broadcast %cst_112 : f32 to vector<8x128xf32>
    %240 = arith.subf %231, %239 : vector<8x128xf32>
    %cst_113 = arith.constant 0.000000e+00 : f32
    %241 = vector.broadcast %cst_113 : f32 to vector<8x128xf32>
    %242 = arith.cmpf ogt, %240, %241 : vector<8x128xf32>
    %243 = arith.extui %242 : vector<8x128xi1> to vector<8x128xi32>
    %244 = arith.sitofp %243 : vector<8x128xi32> to vector<8x128xf32>
    %cst_114 = arith.constant 0.899999976 : f32
    %245 = vector.broadcast %cst_114 : f32 to vector<8x128xf32>
    %246 = arith.mulf %245, %225 : vector<8x128xf32>
    %247 = arith.addf %246, %238 : vector<8x128xf32>
    %cst_115 = arith.constant 8.500000e-01 : f32
    %248 = vector.broadcast %cst_115 : f32 to vector<8x128xf32>
    %249 = arith.mulf %248, %231 : vector<8x128xf32>
    %250 = arith.addf %249, %225 : vector<8x128xf32>
    %cst_116 = arith.constant 1.000000e+00 : f32
    %251 = vector.broadcast %cst_116 : f32 to vector<8x128xf32>
    %252 = arith.subf %251, %244 : vector<8x128xf32>
    %253 = arith.mulf %250, %252 : vector<8x128xf32>
    %c0_117 = arith.constant 0 : index
    %c10 = arith.constant 10 : index
    %c0_118 = arith.constant 0 : index
    %254 = vector.load %arg4[%c0_117, %c10, %c0_118] : memref<8x16x128xf32, #tpu.memory_space<vmem>>, vector<8x1x128xf32>
    %255 = vector.shape_cast %254 : vector<8x1x128xf32> to vector<8x128xf32>
    %256 = vector.shape_cast %244 : vector<8x128xf32> to vector<8x1x128xf32>
    tpu.vector_store %arg4[%c0_117, %c10, %c0_118], %256 {strides = array<i32>} : memref<8x16x128xf32, #tpu.memory_space<vmem>>, vector<8x1x128xf32>,
    %c88 = arith.constant 88 : index
    %c0_119 = arith.constant 0 : index
    %257 = vector.load %arg5[%c88, %c0_119] : memref<128x128xf32, #tpu.memory_space<vmem>>, vector<8x128xf32>
    %258 = arith.truncf %244 : vector<8x128xf32> to vector<8x128xbf16>
    %cst_120 = arith.constant dense<0.000000e+00> : vector<8x128xf32>
    %259 = tpu.matmul %258, %8, %cst_120 {dimension_numbers = #tpu.dot_dimension_numbers<[1], [0], [0], [1], [0, 0, 1, 1], [], []>} : vector<8x128xbf16>, vector<128x128xbf16>, vector<8x128xf32> -> vector<8x128xf32>
    %260 = arith.addf %257, %259 : vector<8x128xf32>
    %cst_121 = arith.constant 5.000000e-01 : f32
    %261 = vector.broadcast %cst_121 : f32 to vector<8x128xf32>
    %262 = arith.subf %253, %261 : vector<8x128xf32>
    %cst_122 = arith.constant 0.000000e+00 : f32
    %263 = vector.broadcast %cst_122 : f32 to vector<8x128xf32>
    %264 = arith.cmpf ogt, %262, %263 : vector<8x128xf32>
    %265 = arith.extui %264 : vector<8x128xi1> to vector<8x128xi32>
    %266 = arith.sitofp %265 : vector<8x128xi32> to vector<8x128xf32>
    %cst_123 = arith.constant 0.899999976 : f32
    %267 = vector.broadcast %cst_123 : f32 to vector<8x128xf32>
    %268 = arith.mulf %267, %247 : vector<8x128xf32>
    %269 = arith.addf %268, %260 : vector<8x128xf32>
    %cst_124 = arith.constant 8.500000e-01 : f32
    %270 = vector.broadcast %cst_124 : f32 to vector<8x128xf32>
    %271 = arith.mulf %270, %253 : vector<8x128xf32>
    %272 = arith.addf %271, %247 : vector<8x128xf32>
    %cst_125 = arith.constant 1.000000e+00 : f32
    %273 = vector.broadcast %cst_125 : f32 to vector<8x128xf32>
    %274 = arith.subf %273, %266 : vector<8x128xf32>
    %275 = arith.mulf %272, %274 : vector<8x128xf32>
    %c0_126 = arith.constant 0 : index
    %c11 = arith.constant 11 : index
    %c0_127 = arith.constant 0 : index
    %276 = vector.load %arg4[%c0_126, %c11, %c0_127] : memref<8x16x128xf32, #tpu.memory_space<vmem>>, vector<8x1x128xf32>
    %277 = vector.shape_cast %276 : vector<8x1x128xf32> to vector<8x128xf32>
    %278 = vector.shape_cast %266 : vector<8x128xf32> to vector<8x1x128xf32>
    tpu.vector_store %arg4[%c0_126, %c11, %c0_127], %278 {strides = array<i32>} : memref<8x16x128xf32, #tpu.memory_space<vmem>>, vector<8x1x128xf32>,
    %c96 = arith.constant 96 : index
    %c0_128 = arith.constant 0 : index
    %279 = vector.load %arg5[%c96, %c0_128] : memref<128x128xf32, #tpu.memory_space<vmem>>, vector<8x128xf32>
    %280 = arith.truncf %266 : vector<8x128xf32> to vector<8x128xbf16>
    %cst_129 = arith.constant dense<0.000000e+00> : vector<8x128xf32>
    %281 = tpu.matmul %280, %8, %cst_129 {dimension_numbers = #tpu.dot_dimension_numbers<[1], [0], [0], [1], [0, 0, 1, 1], [], []>} : vector<8x128xbf16>, vector<128x128xbf16>, vector<8x128xf32> -> vector<8x128xf32>
    %282 = arith.addf %279, %281 : vector<8x128xf32>
    %cst_130 = arith.constant 5.000000e-01 : f32
    %283 = vector.broadcast %cst_130 : f32 to vector<8x128xf32>
    %284 = arith.subf %275, %283 : vector<8x128xf32>
    %cst_131 = arith.constant 0.000000e+00 : f32
    %285 = vector.broadcast %cst_131 : f32 to vector<8x128xf32>
    %286 = arith.cmpf ogt, %284, %285 : vector<8x128xf32>
    %287 = arith.extui %286 : vector<8x128xi1> to vector<8x128xi32>
    %288 = arith.sitofp %287 : vector<8x128xi32> to vector<8x128xf32>
    %cst_132 = arith.constant 0.899999976 : f32
    %289 = vector.broadcast %cst_132 : f32 to vector<8x128xf32>
    %290 = arith.mulf %289, %269 : vector<8x128xf32>
    %291 = arith.addf %290, %282 : vector<8x128xf32>
    %cst_133 = arith.constant 8.500000e-01 : f32
    %292 = vector.broadcast %cst_133 : f32 to vector<8x128xf32>
    %293 = arith.mulf %292, %275 : vector<8x128xf32>
    %294 = arith.addf %293, %269 : vector<8x128xf32>
    %cst_134 = arith.constant 1.000000e+00 : f32
    %295 = vector.broadcast %cst_134 : f32 to vector<8x128xf32>
    %296 = arith.subf %295, %288 : vector<8x128xf32>
    %297 = arith.mulf %294, %296 : vector<8x128xf32>
    %c0_135 = arith.constant 0 : index
    %c12 = arith.constant 12 : index
    %c0_136 = arith.constant 0 : index
    %298 = vector.load %arg4[%c0_135, %c12, %c0_136] : memref<8x16x128xf32, #tpu.memory_space<vmem>>, vector<8x1x128xf32>
    %299 = vector.shape_cast %298 : vector<8x1x128xf32> to vector<8x128xf32>
    %300 = vector.shape_cast %288 : vector<8x128xf32> to vector<8x1x128xf32>
    tpu.vector_store %arg4[%c0_135, %c12, %c0_136], %300 {strides = array<i32>} : memref<8x16x128xf32, #tpu.memory_space<vmem>>, vector<8x1x128xf32>,
    %c104 = arith.constant 104 : index
    %c0_137 = arith.constant 0 : index
    %301 = vector.load %arg5[%c104, %c0_137] : memref<128x128xf32, #tpu.memory_space<vmem>>, vector<8x128xf32>
    %302 = arith.truncf %288 : vector<8x128xf32> to vector<8x128xbf16>
    %cst_138 = arith.constant dense<0.000000e+00> : vector<8x128xf32>
    %303 = tpu.matmul %302, %8, %cst_138 {dimension_numbers = #tpu.dot_dimension_numbers<[1], [0], [0], [1], [0, 0, 1, 1], [], []>} : vector<8x128xbf16>, vector<128x128xbf16>, vector<8x128xf32> -> vector<8x128xf32>
    %304 = arith.addf %301, %303 : vector<8x128xf32>
    %cst_139 = arith.constant 5.000000e-01 : f32
    %305 = vector.broadcast %cst_139 : f32 to vector<8x128xf32>
    %306 = arith.subf %297, %305 : vector<8x128xf32>
    %cst_140 = arith.constant 0.000000e+00 : f32
    %307 = vector.broadcast %cst_140 : f32 to vector<8x128xf32>
    %308 = arith.cmpf ogt, %306, %307 : vector<8x128xf32>
    %309 = arith.extui %308 : vector<8x128xi1> to vector<8x128xi32>
    %310 = arith.sitofp %309 : vector<8x128xi32> to vector<8x128xf32>
    %cst_141 = arith.constant 0.899999976 : f32
    %311 = vector.broadcast %cst_141 : f32 to vector<8x128xf32>
    %312 = arith.mulf %311, %291 : vector<8x128xf32>
    %313 = arith.addf %312, %304 : vector<8x128xf32>
    %cst_142 = arith.constant 8.500000e-01 : f32
    %314 = vector.broadcast %cst_142 : f32 to vector<8x128xf32>
    %315 = arith.mulf %314, %297 : vector<8x128xf32>
    %316 = arith.addf %315, %291 : vector<8x128xf32>
    %cst_143 = arith.constant 1.000000e+00 : f32
    %317 = vector.broadcast %cst_143 : f32 to vector<8x128xf32>
    %318 = arith.subf %317, %310 : vector<8x128xf32>
    %319 = arith.mulf %316, %318 : vector<8x128xf32>
    %c0_144 = arith.constant 0 : index
    %c13 = arith.constant 13 : index
    %c0_145 = arith.constant 0 : index
    %320 = vector.load %arg4[%c0_144, %c13, %c0_145] : memref<8x16x128xf32, #tpu.memory_space<vmem>>, vector<8x1x128xf32>
    %321 = vector.shape_cast %320 : vector<8x1x128xf32> to vector<8x128xf32>
    %322 = vector.shape_cast %310 : vector<8x128xf32> to vector<8x1x128xf32>
    tpu.vector_store %arg4[%c0_144, %c13, %c0_145], %322 {strides = array<i32>} : memref<8x16x128xf32, #tpu.memory_space<vmem>>, vector<8x1x128xf32>,
    %c112 = arith.constant 112 : index
    %c0_146 = arith.constant 0 : index
    %323 = vector.load %arg5[%c112, %c0_146] : memref<128x128xf32, #tpu.memory_space<vmem>>, vector<8x128xf32>
    %324 = arith.truncf %310 : vector<8x128xf32> to vector<8x128xbf16>
    %cst_147 = arith.constant dense<0.000000e+00> : vector<8x128xf32>
    %325 = tpu.matmul %324, %8, %cst_147 {dimension_numbers = #tpu.dot_dimension_numbers<[1], [0], [0], [1], [0, 0, 1, 1], [], []>} : vector<8x128xbf16>, vector<128x128xbf16>, vector<8x128xf32> -> vector<8x128xf32>
    %326 = arith.addf %323, %325 : vector<8x128xf32>
    %cst_148 = arith.constant 5.000000e-01 : f32
    %327 = vector.broadcast %cst_148 : f32 to vector<8x128xf32>
    %328 = arith.subf %319, %327 : vector<8x128xf32>
    %cst_149 = arith.constant 0.000000e+00 : f32
    %329 = vector.broadcast %cst_149 : f32 to vector<8x128xf32>
    %330 = arith.cmpf ogt, %328, %329 : vector<8x128xf32>
    %331 = arith.extui %330 : vector<8x128xi1> to vector<8x128xi32>
    %332 = arith.sitofp %331 : vector<8x128xi32> to vector<8x128xf32>
    %cst_150 = arith.constant 0.899999976 : f32
    %333 = vector.broadcast %cst_150 : f32 to vector<8x128xf32>
    %334 = arith.mulf %333, %313 : vector<8x128xf32>
    %335 = arith.addf %334, %326 : vector<8x128xf32>
    %cst_151 = arith.constant 8.500000e-01 : f32
    %336 = vector.broadcast %cst_151 : f32 to vector<8x128xf32>
    %337 = arith.mulf %336, %319 : vector<8x128xf32>
    %338 = arith.addf %337, %313 : vector<8x128xf32>
    %cst_152 = arith.constant 1.000000e+00 : f32
    %339 = vector.broadcast %cst_152 : f32 to vector<8x128xf32>
    %340 = arith.subf %339, %332 : vector<8x128xf32>
    %341 = arith.mulf %338, %340 : vector<8x128xf32>
    %c0_153 = arith.constant 0 : index
    %c14 = arith.constant 14 : index
    %c0_154 = arith.constant 0 : index
    %342 = vector.load %arg4[%c0_153, %c14, %c0_154] : memref<8x16x128xf32, #tpu.memory_space<vmem>>, vector<8x1x128xf32>
    %343 = vector.shape_cast %342 : vector<8x1x128xf32> to vector<8x128xf32>
    %344 = vector.shape_cast %332 : vector<8x128xf32> to vector<8x1x128xf32>
    tpu.vector_store %arg4[%c0_153, %c14, %c0_154], %344 {strides = array<i32>} : memref<8x16x128xf32, #tpu.memory_space<vmem>>, vector<8x1x128xf32>,
    %c120 = arith.constant 120 : index
    %c0_155 = arith.constant 0 : index
    %345 = vector.load %arg5[%c120, %c0_155] : memref<128x128xf32, #tpu.memory_space<vmem>>, vector<8x128xf32>
    %346 = arith.truncf %332 : vector<8x128xf32> to vector<8x128xbf16>
    %cst_156 = arith.constant dense<0.000000e+00> : vector<8x128xf32>
    %347 = tpu.matmul %346, %8, %cst_156 {dimension_numbers = #tpu.dot_dimension_numbers<[1], [0], [0], [1], [0, 0, 1, 1], [], []>} : vector<8x128xbf16>, vector<128x128xbf16>, vector<8x128xf32> -> vector<8x128xf32>
    %348 = arith.addf %345, %347 : vector<8x128xf32>
    %cst_157 = arith.constant 5.000000e-01 : f32
    %349 = vector.broadcast %cst_157 : f32 to vector<8x128xf32>
    %350 = arith.subf %341, %349 : vector<8x128xf32>
    %cst_158 = arith.constant 0.000000e+00 : f32
    %351 = vector.broadcast %cst_158 : f32 to vector<8x128xf32>
    %352 = arith.cmpf ogt, %350, %351 : vector<8x128xf32>
    %353 = arith.extui %352 : vector<8x128xi1> to vector<8x128xi32>
    %354 = arith.sitofp %353 : vector<8x128xi32> to vector<8x128xf32>
    %cst_159 = arith.constant 0.899999976 : f32
    %355 = vector.broadcast %cst_159 : f32 to vector<8x128xf32>
    %356 = arith.mulf %355, %335 : vector<8x128xf32>
    %357 = arith.addf %356, %348 : vector<8x128xf32>
    %cst_160 = arith.constant 8.500000e-01 : f32
    %358 = vector.broadcast %cst_160 : f32 to vector<8x128xf32>
    %359 = arith.mulf %358, %341 : vector<8x128xf32>
    %360 = arith.addf %359, %335 : vector<8x128xf32>
    %cst_161 = arith.constant 1.000000e+00 : f32
    %361 = vector.broadcast %cst_161 : f32 to vector<8x128xf32>
    %362 = arith.subf %361, %354 : vector<8x128xf32>
    %363 = arith.mulf %360, %362 : vector<8x128xf32>
    %c0_162 = arith.constant 0 : index
    %c15 = arith.constant 15 : index
    %c0_163 = arith.constant 0 : index
    %364 = vector.load %arg4[%c0_162, %c15, %c0_163] : memref<8x16x128xf32, #tpu.memory_space<vmem>>, vector<8x1x128xf32>
    %365 = vector.shape_cast %364 : vector<8x1x128xf32> to vector<8x128xf32>
    %366 = vector.shape_cast %354 : vector<8x128xf32> to vector<8x1x128xf32>
    tpu.vector_store %arg4[%c0_162, %c15, %c0_163], %366 {strides = array<i32>} : memref<8x16x128xf32, #tpu.memory_space<vmem>>, vector<8x1x128xf32>,
    %c0_164 = arith.constant 0 : index
    %c0_165 = arith.constant 0 : index
    %c0_166 = arith.constant 0 : index
    %367 = vector.load %arg6[%c0_164, %c0_165, %c0_166] : memref<3x8x128xf32, #tpu.memory_space<vmem>>, vector<1x8x128xf32>
    %368 = vector.shape_cast %367 : vector<1x8x128xf32> to vector<8x128xf32>
    %369 = vector.shape_cast %357 : vector<8x128xf32> to vector<1x8x128xf32>
    tpu.vector_store %arg6[%c0_164, %c0_165, %c0_166], %369 {strides = array<i32>} : memref<3x8x128xf32, #tpu.memory_space<vmem>>, vector<1x8x128xf32>,
    %c1_167 = arith.constant 1 : index
    %c0_168 = arith.constant 0 : index
    %c0_169 = arith.constant 0 : index
    %370 = vector.load %arg6[%c1_167, %c0_168, %c0_169] : memref<3x8x128xf32, #tpu.memory_space<vmem>>, vector<1x8x128xf32>
    %371 = vector.shape_cast %370 : vector<1x8x128xf32> to vector<8x128xf32>
    %372 = vector.shape_cast %363 : vector<8x128xf32> to vector<1x8x128xf32>
    tpu.vector_store %arg6[%c1_167, %c0_168, %c0_169], %372 {strides = array<i32>} : memref<3x8x128xf32, #tpu.memory_space<vmem>>, vector<1x8x128xf32>,
    %c2_170 = arith.constant 2 : index
    %c0_171 = arith.constant 0 : index
    %c0_172 = arith.constant 0 : index
    %373 = vector.load %arg6[%c2_170, %c0_171, %c0_172] : memref<3x8x128xf32, #tpu.memory_space<vmem>>, vector<1x8x128xf32>
    %374 = vector.shape_cast %373 : vector<1x8x128xf32> to vector<8x128xf32>
    %375 = vector.shape_cast %354 : vector<8x128xf32> to vector<1x8x128xf32>
    tpu.vector_store %arg6[%c2_170, %c0_171, %c0_172], %375 {strides = array<i32>} : memref<3x8x128xf32, #tpu.memory_space<vmem>>, vector<1x8x128xf32>,
    return
  }
  func.func @transform_0(%arg0: i32) -> (i32, i32) {
    %c0_i32 = arith.constant 0 : i32
    %c0_i32_0 = arith.constant 0 : i32
    return %arg0, %c0_i32 : i32, i32
  }
  func.func @transform_1(%arg0: i32) -> (i32, i32) {
    %c0_i32 = arith.constant 0 : i32
    %c0_i32_0 = arith.constant 0 : i32
    %c0_i32_1 = arith.constant 0 : i32
    return %c0_i32, %c0_i32_0 : i32, i32
  }
  func.func @transform_2(%arg0: i32) -> (i32, i32) {
    %c0_i32 = arith.constant 0 : i32
    %c0_i32_0 = arith.constant 0 : i32
    %c0_i32_1 = arith.constant 0 : i32
    return %c0_i32, %c0_i32_0 : i32, i32
  }
  func.func @transform_3(%arg0: i32) -> (i32, i32, i32) {
    %c0_i32 = arith.constant 0 : i32
    %c0_i32_0 = arith.constant 0 : i32
    %c0_i32_1 = arith.constant 0 : i32
    return %c0_i32, %arg0, %c0_i32_0 : i32, i32, i32
  }
}

</mosaic_0001>

<bundles_post_ra>
// kernel: tpu_custom_call.1
= control target key start
LH: loop header
LB: loop body
LE: loop exit
PB: predicated region body
PF: predicated region fallthrough
CT: control target
= control target key end

     0   :  { %vm92_vm0 = vcmask 1043456   ;;  %v2893_v1 = vmov 0.0   ;;  %vm2894_vm1 = vmmov 0   ;;  %vm67_vm2 = vcmask 326656   ;;  %s3539_s0 = inlined_call_operand.vmem [shape: f32[128,40], index: 0, kind: input, shape index: {}]   ;;  %s3540_s1 = inlined_call_operand.vmem [shape: bf16[40,128], index: 1, kind: input, shape index: {}]   ;;  %s3541_s2 = inlined_call_operand.vmem [shape: bf16[128,128], index: 2, kind: input, shape index: {}]   ;;  %s3542_s3 = inlined_call_operand.hbm [shape: f32[8,16,128], index: 3, kind: output, shape index: {}]  }
   0x1   :  { %v2852_v0 = vld [vmem:[%s3540_s1 + $0x10] ss:$0 sps:$4 sm:$0xff]   ;;  %2523 = vmatprep.subr.bf16.mxu1 %v2893_v1  ;;  %v2928_v2 = vld [vmem:[%s3541_s2 + $0x38] sm:$0xff]   ;;  %v2854_v4 = vld [vmem:[%s3540_s1 + $0x8] sm:$0xff]   ;;  %2539 = vmatprep.mubr.msk.bf16.mxu1 %vm2894_vm1, %v2893_v1 }
   0x2   :  { %2843 = vmatprep.subr.msk.bf16.mxu0 %vm92_vm0, %v2852_v0  ;;  %v94_v3 = vsel %vm92_vm0, %v2852_v0, 0  ;;  %2524 = vmatpush3.bf16.msra.mxu1 %v2928_v2  ;;  %v2937_v5 = vld [vmem:[%s3541_s2 + $0x30] sm:$0xff]   ;;  %v2856_v6 = vld [vmem:[%s3540_s1] sm:$0xff]   ;;  %v2946_v7 = vld [vmem:[%s3541_s2 + $0x28] sm:$0xff]  }
   0x3   :  { %2502 = vmatpush3.bf16.msra.mxu0 %v94_v3  ;;  %2525 = vmatprep.subr.bf16.mxu1 %v2893_v1  ;;  %v23_v8 = vld [vmem:[%s3539_s0] sm:$0xff]  ;;  %v24_v9 = vld [vmem:[%s3539_s0 + $0x8] sm:$0xff]  ;;  %v25_v10 = vld [vmem:[%s3539_s0 + $0x10] sm:$0xff] }
   0x4   :  { %2503 = vmatprep.subr.bf16.mxu0 %v2854_v4  ;;  %v39_v11 = vpack.c.bf16 %v24_v9, %v23_v8  ;;  %v26_v12 = vld [vmem:[%s3539_s0 + $0x18] sm:$0xff]  ;;  %v27_v14 = vld [vmem:[%s3539_s0 + $0x20] sm:$0xff]  ;;  %v28_v15 = vld [vmem:[%s3539_s0 + $0x28] sm:$0xff] }
   0x5   :  { %v40_v13 = vpack.c.bf16 %v26_v12, %v25_v10  ;;  %v2975_v16 = vld [vmem:[%s3541_s2 + $0x20] sm:$0xff]   ;;  %v41_v17 = vpack.c.bf16 %v28_v15, %v27_v14  ;;  %v2985_v18 = vld [vmem:[%s3541_s2 + $0x18] sm:$0xff]   ;;  %v29_v19 = vld [vmem:[%s3539_s0 + $0x30] sm:$0xff] }
   0x6   :  { %2526 = vmatpush3.bf16.msra.mxu1 %v2937_v5  ;;  %2507 = vmatprep.mubr.msk.bf16.mxu0 %vm67_vm2, %v39_v11  ;;  %v30_v20 = vld [vmem:[%s3539_s0 + $0x38] sm:$0xff] }
   0x7   :  { %2504 = vmatpush3.bf16.msra.mxu0 %v2854_v4  ;;  %2527 = vmatprep.subr.bf16.mxu1 %v2893_v1 }
   0x8   :  { %2505 = vmatprep.subr.bf16.mxu0 %v2856_v6 }
   0xa   :  { %2528 = vmatpush3.bf16.msra.mxu1 %v2946_v7 }
   0xb   :  { %2506 = vmatpush3.bf16.msra.mxu0 %v2856_v6  ;;  %2529 = vmatprep.subr.bf16.mxu1 %v2893_v1 }
   0xc   :  { %2543 = vmatprep.subr.bf16.mxu0 %v2893_v1 }
   0xe   :  { %2508 = vmatmul.mubr.msk.bf16.vlgmr.msra.gmra.mxu0 %vm67_vm2, %v40_v13  ;;  %2530 = vmatpush3.bf16.msra.mxu1 %v2975_v16 }
   0xf   :  { %2544 = vmatpush3.bf16.msra.mxu0 %v2928_v2  ;;  %2531 = vmatprep.subr.bf16.mxu1 %v2893_v1 }
  0x10   :  { %2545 = vmatprep.subr.bf16.mxu0 %v2893_v1  ;;  %2511 = vmatprep.mubr.msk.bf16.mxu0 %vm67_vm2, %v41_v17 }
  0x11   :  { %8 = vsyncpa [#allocation5], 0  ;;  %v42_v21 = vpack.c.bf16 %v30_v20, %v29_v19  ;;  %v31_v22 = vld [vmem:[%s3539_s0 + $0x40] sm:$0xff]  ;;  %v32_v23 = vld [vmem:[%s3539_s0 + $0x48] sm:$0xff]  ;;  %v2895_v36 = vmov 0.0|0.0   ;;  %v336_v50 = vlaneseq }
  0x12   :  { %2532 = vmatpush3.bf16.msra.mxu1 %v2985_v18  ;;  %v3007_v24 = vld [vmem:[%s3541_s2 + $0x10] sm:$0xff]   ;;  %v43_v25 = vpack.c.bf16 %v32_v23, %v31_v22  ;;  %v3017_v26 = vld [vmem:[%s3541_s2 + $0x8] sm:$0xff]   ;;  %v34_v28 = vld [vmem:[%s3539_s0 + $0x58] sm:$0xff]  ;;  %v2896_v39 = vmov 1.0|1.0  }
  0x13   :  { %2546 = vmatpush3.bf16.msra.mxu0 %v2937_v5  ;;  %2533 = vmatprep.subr.bf16.mxu1 %v2893_v1  ;;  %v33_v27 = vld [vmem:[%s3539_s0 + $0x50] sm:$0xff]  ;;  %v35_v30 = vld [vmem:[%s3539_s0 + $0x60] sm:$0xff]  ;;  %v36_v31 = vld [vmem:[%s3539_s0 + $0x68] sm:$0xff]  ;;  %v2897_v48 = vmov 1966171168   ;;  %v337_v54 = vshrl.u32 %v336_v50, 7 }
  0x14   :  { %2547 = vmatprep.subr.bf16.mxu0 %v2893_v1  ;;  %v44_v29 = vpack.c.bf16 %v34_v28, %v33_v27  ;;  %v3039_v32 = vld [vmem:[%s3541_s2] sm:$0xff]   ;;  %v45_v33 = vpack.c.bf16 %v36_v31, %v35_v30  ;;  %v37_v34 = vld [vmem:[%s3539_s0 + $0x70] sm:$0xff]  ;;  %v38_v35 = vld [vmem:[%s3539_s0 + $0x78] sm:$0xff]  ;;  %v334_v49 = vunpack.c.l.s4 %v2897_v48 }
  0x15   :  { %v46_v37 = vpack.c.bf16 %v38_v35, %v37_v34  ;;  %vm3072_vm3 = vmpackc.low %vm2894_vm1, %vm2894_vm1 }
  0x16   :  { %2512 = vmatmul.mubr.msk.bf16.gmra.mxu0 %vm67_vm2, %v42_v21  ;;  %2534 = vmatpush3.bf16.msra.mxu1 %v3007_v24  ;;  %v335_v53 = vunpack.c.0.s8 %v334_v49 }
  0x17   :  { %2548 = vmatpush3.bf16.msra.mxu0 %v2946_v7  ;;  %2535 = vmatprep.subr.bf16.mxu1 %v2893_v1 }
  0x18   :  { %2549 = vmatprep.subr.bf16.mxu0 %v2893_v1  ;;  %2515 = vmatprep.mubr.msk.bf16.mxu0 %vm67_vm2, %v43_v25  ;;  %v3150_v60 = vsub.s32 %v335_v53, %v337_v54 }
  0x1a   :  { %2536 = vmatpush3.bf16.msra.mxu1 %v3017_v26 }
  0x1b   :  { %2550 = vmatpush3.bf16.msra.mxu0 %v2975_v16  ;;  %2537 = vmatprep.subr.bf16.mxu1 %v2893_v1 }
  0x1c   :  { %2551 = vmatprep.subr.bf16.mxu0 %v2893_v1 }
  0x1e   :  { %2516 = vmatmul.mubr.msk.bf16.gmra.mxu0 %vm67_vm2, %v44_v29  ;;  %2538 = vmatpush3.bf16.msra.mxu1 %v3039_v32 }
  0x1f   :  { %2552 = vmatpush3.bf16.msra.mxu0 %v2985_v18  ;;  %2563 = vmatprep.subr.bf16.mxu1 %v2893_v1 }
  0x20   :  { %2553 = vmatprep.subr.bf16.mxu0 %v2893_v1  ;;  %2519 = vmatprep.mubr.msk.bf16.mxu0 %vm67_vm2, %v45_v33 }
  0x21   :  { %2540 = vmatmul.mubr.bf16.vlgmr.msra.gmra.mxu1 %v2895_v36 }
  0x22   :  { %2564 = vmatpush3.bf16.msra.mxu1 %v2928_v2  ;;  %2579 = vmatprep.mubr.msk.bf16.mxu1 %vm2894_vm1, %v2893_v1 }
  0x23   :  { %2554 = vmatpush3.bf16.msra.mxu0 %v3007_v24  ;;  %2565 = vmatprep.subr.bf16.mxu1 %v2893_v1 }
  0x24   :  { %2555 = vmatprep.subr.bf16.mxu0 %v2893_v1 }
  0x26   :  { %2520 = vmatmul.mubr.msk.bf16.gmra.mxu0 %vm67_vm2, %v46_v37  ;;  %2566 = vmatpush3.bf16.msra.mxu1 %v2937_v5 }
  0x27   :  { %2556 = vmatpush3.bf16.msra.mxu0 %v3017_v26  ;;  %2567 = vmatprep.subr.bf16.mxu1 %v2893_v1 }
  0x28   :  { %2557 = vmatprep.subr.bf16.mxu0 %v2893_v1  ;;  %2559 = vmatprep.mubr.msk.bf16.mxu0 %vm2894_vm1, %v2893_v1 }
  0x2a   :  { %2568 = vmatpush3.bf16.msra.mxu1 %v2946_v7 }
  0x2b   :  { %2558 = vmatpush3.bf16.msra.mxu0 %v3039_v32  ;;  %2569 = vmatprep.subr.bf16.mxu1 %v2893_v1 }
  0x2c   :  { %2583 = vmatprep.subr.bf16.mxu0 %v2893_v1 }
  0x2e   :  { %2560 = vmatmul.mubr.msk.bf16.vlgmr.msra.gmra.mxu0 %vm3072_vm3, %v2896_v39  ;;  %2570 = vmatpush3.bf16.msra.mxu1 %v2975_v16 }
  0x2f   :  { %2584 = vmatpush3.bf16.msra.mxu0 %v2928_v2  ;;  %2571 = vmatprep.subr.bf16.mxu1 %v2893_v1 }
  0x30   :  { %2585 = vmatprep.subr.bf16.mxu0 %v2893_v1  ;;  %2599 = vmatprep.mubr.msk.bf16.mxu0 %vm2894_vm1, %v2893_v1 }
  0x32   :  { %2572 = vmatpush3.bf16.msra.mxu1 %v2985_v18 }
  0x33   :  { %2586 = vmatpush3.bf16.msra.mxu0 %v2937_v5  ;;  %2573 = vmatprep.subr.bf16.mxu1 %v2893_v1 }
  0x34   :  { %2587 = vmatprep.subr.bf16.mxu0 %v2893_v1 }
  0x36   :  { %2574 = vmatpush3.bf16.msra.mxu1 %v3007_v24 }
  0x37   :  { %2588 = vmatpush3.bf16.msra.mxu0 %v2946_v7  ;;  %2575 = vmatprep.subr.bf16.mxu1 %v2893_v1 }
  0x38   :  { %2589 = vmatprep.subr.bf16.mxu0 %v2893_v1 }
  0x3a   :  { %2576 = vmatpush3.bf16.msra.mxu1 %v3017_v26 }
  0x3b   :  { %2590 = vmatpush3.bf16.msra.mxu0 %v2975_v16  ;;  %2577 = vmatprep.subr.bf16.mxu1 %v2893_v1 }
  0x3c   :  { %2591 = vmatprep.subr.bf16.mxu0 %v2893_v1 }
  0x3e   :  { %2578 = vmatpush3.bf16.msra.mxu1 %v3039_v32 }
  0x3f   :  { %2592 = vmatpush3.bf16.msra.mxu0 %v2985_v18  ;;  %2603 = vmatprep.subr.bf16.mxu1 %v2893_v1 }
  0x40   :  { %2593 = vmatprep.subr.bf16.mxu0 %v2893_v1 }
  0x41   :  { %2580 = vmatmul.mubr.msk.bf16.vlgmr.msra.gmra.mxu1 %vm3072_vm3, %v2896_v39 }
  0x42   :  { %2604 = vmatpush3.bf16.msra.mxu1 %v2928_v2  ;;  %2619 = vmatprep.mubr.msk.bf16.mxu1 %vm2894_vm1, %v2893_v1 }
  0x43   :  { %2594 = vmatpush3.bf16.msra.mxu0 %v3007_v24  ;;  %2605 = vmatprep.subr.bf16.mxu1 %v2893_v1 }
  0x44   :  { %2595 = vmatprep.subr.bf16.mxu0 %v2893_v1 }
  0x46   :  { %2606 = vmatpush3.bf16.msra.mxu1 %v2937_v5 }
  0x47   :  { %2596 = vmatpush3.bf16.msra.mxu0 %v3017_v26  ;;  %2607 = vmatprep.subr.bf16.mxu1 %v2893_v1 }
  0x48   :  { %2597 = vmatprep.subr.bf16.mxu0 %v2893_v1 }
  0x4a   :  { %2608 = vmatpush3.bf16.msra.mxu1 %v2946_v7 }
  0x4b   :  { %2598 = vmatpush3.bf16.msra.mxu0 %v3039_v32  ;;  %2609 = vmatprep.subr.bf16.mxu1 %v2893_v1 }
  0x4c   :  { %2623 = vmatprep.subr.bf16.mxu0 %v2893_v1 }
  0x4e   :  { %2610 = vmatpush3.bf16.msra.mxu1 %v2975_v16 }
  0x4f   :  { %2611 = vmatprep.subr.bf16.mxu1 %v2893_v1 }
  0x52   :  { %2612 = vmatpush3.bf16.msra.mxu1 %v2985_v18 }
  0x53   :  { %2613 = vmatprep.subr.bf16.mxu1 %v2893_v1 }
  0x56   :  { %2614 = vmatpush3.bf16.msra.mxu1 %v3007_v24 }
  0x57   :  { %2615 = vmatprep.subr.bf16.mxu1 %v2893_v1 }
  0x5a   :  { %2616 = vmatpush3.bf16.msra.mxu1 %v3017_v26 }
  0x5b   :  { %2617 = vmatprep.subr.bf16.mxu1 %v2893_v1 }
  0x5e   :  { %2618 = vmatpush3.bf16.msra.mxu1 %v3039_v32 }
  0x5f   :  { %2643 = vmatprep.subr.bf16.mxu1 %v2893_v1 }
  0xce   :  { %v3130_v40 = vpop.f32.mrf.mxu0 }
  0xd0   :  { %v130_v41 = vpop.f32.mrf.mxu0 }
  0xd2   :  { %v3132_v42 = vpop.f32.mrf.mxu0 }
  0xd4   :  { %v133_v43 = vpop.f32.mrf.mxu0 }
  0xd6   :  { %v3134_v44 = vpop.f32.mrf.mxu0 }
  0xd8   :  { %v3136_v45 = vpop.f32.mrf.mxu0 }
  0xda   :  { %v3138_v46 = vpop.f32.mrf.mxu0 }
  0xdc   :  { %v3140_v47 = vpop.f32.mrf.mxu0 }
  0xde   :  { %v3142_v51 = vpop.f32.mrf.mxu0 }
  0xe0   :  { %v3144_v52 = vpop.f32.mrf.mxu0 }
  0xe1   :  { %v314_v55 = vpop.f32.mrf.mxu1 }
  0xe2   :  { %v3146_v56 = vpop.f32.mrf.mxu0  ;;  %v320_v57 = vadd.f32 %v314_v55, %v130_v41 }
  0xe3   :  { %v2541_v58 = vpop.f32.mrf.mxu1 }
  0xe4   :  { %v3148_v59 = vpop.f32.mrf.mxu0  ;;  %v2236_v61 = vadd.f32 -0.5, %v320_v57  ;;  %v444_v21 = vmul.f32 0.9, %v320_v57  ;;  %v565_v29 = vmul.f32 0.85, %v320_v57 }
  0xe5   :  { %v317_v62 = vpop.f32.mrf.mxu1 }
  0xe6   :  { %v2521_v63 = vpop.f32.mrf.mxu0  ;;  %vm560_vm4 = vcmp.gt.f32.partialorder %v2236_v61, 0.0 }
  0xe7   :  { %v2237_v0 = vsel %vm560_vm4, 1.0, %v2893_v1  ;;  %v2542_v3 = vpop.f32.mrf.mxu1  ;;  %vm2242_vm5 = vmpackc.low %vm560_vm4, %vm560_vm4 }
  0xe8   :  { %v3153_v4 = vpop.f32.mrf.mxu0  ;;  %v570_v6 = vcombine.high %v2237_v0, %v2237_v0  ;;  %v577_v8 = vrot.slane %v2237_v0, %v3150_v60  ;;  %2600 = vmatmul.mubr.msk.bf16.vlgmr.msra.gmra.mxu0 %vm2242_vm5, %v2896_v39  ;;  %v567_v35 = vsub.f32 1.0, %v2237_v0 }
  0xe9   :  { %2624 = vmatpush3.bf16.msra.mxu0 %v2928_v2  ;;  %2639 = vmatprep.mubr.msk.bf16.mxu0 %vm2894_vm1, %v2893_v1 }
  0xea   :  { %v2522_v9 = vpop.f32.mrf.mxu0  ;;  %v584_v10 = vrot.slane %v570_v6, %v3150_v60  ;;  %v585_v11 = vcombine.high %v577_v8, %v577_v8  ;;  %v593_v12 = vrot.slane %v577_v8, %v3150_v60  ;;  %2238 = vst.sshfl [vmem:[#allocation4 + $0x2] sm:$0x1 pattern:$0x73625140] %v577_v8  ;;  %2625 = vmatprep.subr.bf16.mxu0 %v2893_v1 }
  0xec   :  { %v3163_v13 = vpop.f32.mrf.mxu0  ;;  %v586_v14 = vcombine.high %v584_v10, %v584_v10  ;;  %v600_v15 = vrot.slane %v584_v10, %v3150_v60  ;;  %v607_v17 = vrot.slane %v585_v11, %v3150_v60  ;;  %v615_v19 = vcombine.high %v593_v12, %v593_v12  ;;  %2239 = vst.sshfl [vmem:[#allocation4 + $0x12] sm:$0x1 pattern:$0x73625140] %v585_v11 }
  0xed   :  { %2240 = vst.sshfl [vmem:[#allocation4 + $0x42] sm:$0x1 pattern:$0x73625140] %v584_v10  ;;  %2626 = vmatpush3.bf16.msra.mxu0 %v2937_v5 }
  0xee   :  { %v433_v20 = vpop.f32.mrf.mxu0  ;;  %v614_v22 = vrot.slane %v586_v14, %v3150_v60  ;;  %v616_v23 = vcombine.high %v600_v15, %v600_v15  ;;  %v617_v25 = vcombine.high %v607_v17, %v607_v17  ;;  %629 = vst [vmem:[#allocation4 + $0x22] sm:$0x1] %v615_v19  ;;  %2241 = vst.sshfl [vmem:[#allocation4 + $0x52] sm:$0x1 pattern:$0x73625140] %v586_v14  ;;  %2627 = vmatprep.subr.bf16.mxu0 %v2893_v1 }
  0xef   :  { %v439_v27 = vadd.f32 %v433_v20, %v133_v43 }
  0xf0   :  { %v2561_v28 = vpop.f32.mrf.mxu0  ;;  %v618_v30 = vcombine.high %v614_v22, %v614_v22  ;;  %630 = vst [vmem:[#allocation4 + $0x32] sm:$0x1] %v617_v25  ;;  %633 = vst [vmem:[#allocation4 + $0x62] sm:$0x1] %v616_v23 }
  0xf1   :  { %v445_v31 = vadd.f32 %v444_v21, %v439_v27  ;;  %2628 = vmatpush3.bf16.msra.mxu0 %v2946_v7 }
  0xf2   :  { %v436_v33 = vpop.f32.mrf.mxu0  ;;  %634 = vst [vmem:[#allocation4 + $0x72] sm:$0x1] %v618_v30  ;;  %2629 = vmatprep.subr.bf16.mxu0 %v2893_v1 }
  0xf3   :  { %v566_v34 = vadd.f32 %v565_v29, %v445_v31  ;;  %v563_v8 = vmul.f32 0.9, %v445_v31 }
  0xf4   :  { %v2562_v36 = vpop.f32.mrf.mxu0 }
  0xf5   :  { %v568_v37 = vmul.f32 %v567_v35, %v566_v34  ;;  %2630 = vmatpush3.bf16.msra.mxu0 %v2975_v16 }
  0xf6   :  { %2631 = vmatprep.subr.bf16.mxu0 %v2893_v1 }
  0xf7   :  { %v2244_v38 = vadd.f32 -0.5, %v568_v37  ;;  %v684_v11 = vmul.f32 0.85, %v568_v37 }
  0xf9   :  { %vm679_vm6 = vcmp.gt.f32.partialorder %v2244_v38, 0.0  ;;  %2632 = vmatpush3.bf16.msra.mxu0 %v2985_v18 }
  0xfa   :  { %v2245_v41 = vsel %vm679_vm6, 1.0, %v2893_v1  ;;  %vm2250_vm7 = vmpackc.low %vm679_vm6, %vm679_vm6  ;;  %2633 = vmatprep.subr.bf16.mxu0 %v2893_v1 }
  0xfb   :  { %v689_v43 = vcombine.high %v2245_v41, %v2245_v41  ;;  %v696_v48 = vrot.slane %v2245_v41, %v3150_v60  ;;  %2620 = vmatmul.mubr.msk.bf16.vlgmr.msra.gmra.mxu1 %vm2250_vm7, %v2896_v39  ;;  %v686_v15 = vsub.f32 1.0, %v2245_v41 }
  0xfc   :  { %2644 = vmatpush3.bf16.msra.mxu1 %v2928_v2  ;;  %2659 = vmatprep.mubr.msk.bf16.mxu1 %vm2894_vm1, %v2893_v1 }
  0xfd   :  { %v703_v49 = vrot.slane %v689_v43, %v3150_v60  ;;  %v704_v50 = vcombine.high %v696_v48, %v696_v48  ;;  %v712_v53 = vrot.slane %v696_v48, %v3150_v60  ;;  %2246 = vst.sshfl [vmem:[#allocation4 + $0x3] sm:$0x1 pattern:$0x73625140] %v696_v48  ;;  %2645 = vmatprep.subr.bf16.mxu1 %v2893_v1 }
  0xfe   :  { %2634 = vmatpush3.bf16.msra.mxu0 %v3007_v24 }
  0xff   :  { %v705_v54 = vcombine.high %v703_v49, %v703_v49  ;;  %v719_v55 = vrot.slane %v703_v49, %v3150_v60  ;;  %v726_v57 = vrot.slane %v704_v50, %v3150_v60  ;;  %v734_v58 = vcombine.high %v712_v53, %v712_v53  ;;  %2247 = vst.sshfl [vmem:[#allocation4 + $0x13] sm:$0x1 pattern:$0x73625140] %v704_v50 }
 0x100   :  { %2248 = vst.sshfl [vmem:[#allocation4 + $0x43] sm:$0x1 pattern:$0x73625140] %v703_v49  ;;  %2635 = vmatprep.subr.bf16.mxu0 %v2893_v1  ;;  %2646 = vmatpush3.bf16.msra.mxu1 %v2937_v5 }
 0x101   :  { %v733_v61 = vrot.slane %v705_v54, %v3150_v60  ;;  %v735_v62 = vcombine.high %v719_v55, %v719_v55  ;;  %v736_v63 = vcombine.high %v726_v57, %v726_v57  ;;  %748 = vst [vmem:[#allocation4 + $0x23] sm:$0x1] %v734_v58  ;;  %2249 = vst.sshfl [vmem:[#allocation4 + $0x53] sm:$0x1 pattern:$0x73625140] %v705_v54  ;;  %2647 = vmatprep.subr.bf16.mxu1 %v2893_v1  ;;  %v552_v0 = vpop.f32.mrf.mxu1 }
 0x102   :  { %2636 = vmatpush3.bf16.msra.mxu0 %v3017_v26  ;;  %v558_v6 = vadd.f32 %v3130_v40, %v552_v0 }
 0x103   :  { %v737_v3 = vcombine.high %v733_v61, %v733_v61  ;;  %749 = vst [vmem:[#allocation4 + $0x33] sm:$0x1] %v736_v63  ;;  %752 = vst [vmem:[#allocation4 + $0x63] sm:$0x1] %v735_v62  ;;  %2637 = vmatprep.subr.bf16.mxu0 %v2893_v1  ;;  %v2581_v9 = vpop.f32.mrf.mxu1 }
 0x104   :  { %2648 = vmatpush3.bf16.msra.mxu1 %v2946_v7  ;;  %v3196_v10 = vadd.f32 %v563_v8, %v558_v6 }
 0x105   :  { %753 = vst [vmem:[#allocation4 + $0x73] sm:$0x1] %v737_v3  ;;  %2649 = vmatprep.subr.bf16.mxu1 %v2893_v1  ;;  %v555_v12 = vpop.f32.mrf.mxu1 }
 0x106   :  { %2638 = vmatpush3.bf16.msra.mxu0 %v3039_v32  ;;  %v685_v14 = vadd.f32 %v684_v11, %v3196_v10  ;;  %v682_v41 = vmul.f32 0.9, %v3196_v10 }
 0x107   :  { %2663 = vmatprep.subr.bf16.mxu0 %v2893_v1  ;;  %v2582_v40 = vpop.f32.mrf.mxu1 }
 0x108   :  { %2650 = vmatpush3.bf16.msra.mxu1 %v2975_v16  ;;  %v687_v17 = vmul.f32 %v686_v15, %v685_v14 }
 0x109   :  { %2651 = vmatprep.subr.bf16.mxu1 %v2893_v1 }
 0x10a   :  { %v2252_v19 = vadd.f32 -0.5, %v687_v17  ;;  %v803_v49 = vmul.f32 0.85, %v687_v17 }
 0x10c   :  { %2652 = vmatpush3.bf16.msra.mxu1 %v2985_v18  ;;  %vm798_vm8 = vcmp.gt.f32.partialorder %v2252_v19, 0.0 }
 0x10d   :  { %2653 = vmatprep.subr.bf16.mxu1 %v2893_v1  ;;  %v2253_v20 = vsel %vm798_vm8, 1.0, %v2893_v1  ;;  %vm2258_vm9 = vmpackc.low %vm798_vm8, %vm798_vm8 }
 0x10e   :  { %v808_v21 = vcombine.high %v2253_v20, %v2253_v20  ;;  %v815_v22 = vrot.slane %v2253_v20, %v3150_v60  ;;  %2640 = vmatmul.mubr.msk.bf16.vlgmr.msra.gmra.mxu0 %vm2258_vm9, %v2896_v39  ;;  %v805_v54 = vsub.f32 1.0, %v2253_v20 }
 0x10f   :  { %2664 = vmatpush3.bf16.msra.mxu0 %v2928_v2  ;;  %2679 = vmatprep.mubr.msk.bf16.mxu0 %vm2894_vm1, %v2893_v1 }
 0x110   :  { %2654 = vmatpush3.bf16.msra.mxu1 %v3007_v24  ;;  %v822_v23 = vrot.slane %v808_v21, %v3150_v60  ;;  %v823_v25 = vcombine.high %v815_v22, %v815_v22  ;;  %v831_v27 = vrot.slane %v815_v22, %v3150_v60  ;;  %2254 = vst.sshfl [vmem:[#allocation4 + $0x4] sm:$0x1 pattern:$0x73625140] %v815_v22 }
 0x111   :  { %2665 = vmatprep.subr.bf16.mxu0 %v2893_v1  ;;  %2655 = vmatprep.subr.bf16.mxu1 %v2893_v1 }
 0x112   :  { %v824_v28 = vcombine.high %v822_v23, %v822_v23  ;;  %v838_v29 = vrot.slane %v822_v23, %v3150_v60  ;;  %v845_v30 = vrot.slane %v823_v25, %v3150_v60  ;;  %v853_v31 = vcombine.high %v831_v27, %v831_v27  ;;  %2255 = vst.sshfl [vmem:[#allocation4 + $0x14] sm:$0x1 pattern:$0x73625140] %v823_v25 }
 0x113   :  { %2256 = vst.sshfl [vmem:[#allocation4 + $0x44] sm:$0x1 pattern:$0x73625140] %v822_v23  ;;  %2666 = vmatpush3.bf16.msra.mxu0 %v2937_v5 }
 0x114   :  { %2656 = vmatpush3.bf16.msra.mxu1 %v3017_v26  ;;  %v852_v33 = vrot.slane %v824_v28, %v3150_v60  ;;  %v854_v34 = vcombine.high %v838_v29, %v838_v29  ;;  %v855_v35 = vcombine.high %v845_v30, %v845_v30  ;;  %867 = vst [vmem:[#allocation4 + $0x24] sm:$0x1] %v853_v31  ;;  %2257 = vst.sshfl [vmem:[#allocation4 + $0x54] sm:$0x1 pattern:$0x73625140] %v824_v28 }
 0x115   :  { %2667 = vmatprep.subr.bf16.mxu0 %v2893_v1  ;;  %2657 = vmatprep.subr.bf16.mxu1 %v2893_v1 }
 0x116   :  { %v856_v36 = vcombine.high %v852_v33, %v852_v33  ;;  %868 = vst [vmem:[#allocation4 + $0x34] sm:$0x1] %v855_v35  ;;  %871 = vst [vmem:[#allocation4 + $0x64] sm:$0x1] %v854_v34 }
 0x117   :  { %2668 = vmatpush3.bf16.msra.mxu0 %v2946_v7 }
 0x118   :  { %2658 = vmatpush3.bf16.msra.mxu1 %v3039_v32  ;;  %872 = vst [vmem:[#allocation4 + $0x74] sm:$0x1] %v856_v36  ;;  %2669 = vmatprep.subr.bf16.mxu0 %v2893_v1 }
 0x119   :  { %2683 = vmatprep.subr.bf16.mxu1 %v2893_v1 }
 0x11b   :  { %2670 = vmatpush3.bf16.msra.mxu0 %v2975_v16 }
 0x11c   :  { %2671 = vmatprep.subr.bf16.mxu0 %v2893_v1 }
 0x11f   :  { %2672 = vmatpush3.bf16.msra.mxu0 %v2985_v18 }
 0x120   :  { %2673 = vmatprep.subr.bf16.mxu0 %v2893_v1 }
 0x123   :  { %2674 = vmatpush3.bf16.msra.mxu0 %v3007_v24 }
 0x124   :  { %2675 = vmatprep.subr.bf16.mxu0 %v2893_v1 }
 0x127   :  { %2676 = vmatpush3.bf16.msra.mxu0 %v3017_v26 }
 0x128   :  { %2677 = vmatprep.subr.bf16.mxu0 %v2893_v1 }
 0x12b   :  { %2678 = vmatpush3.bf16.msra.mxu0 %v3039_v32 }
 0x12c   :  { %2703 = vmatprep.subr.bf16.mxu0 %v2893_v1 }
 0x1a8   :  { %v671_v37 = vpop.f32.mrf.mxu0 }
 0x1a9   :  { %v677_v38 = vadd.f32 %v3132_v42, %v671_v37 }
 0x1aa   :  { %v2601_v43 = vpop.f32.mrf.mxu0 }
 0x1ab   :  { %v683_v48 = vadd.f32 %v682_v41, %v677_v38 }
 0x1ac   :  { %v674_v50 = vpop.f32.mrf.mxu0 }
 0x1ad   :  { %v804_v53 = vadd.f32 %v803_v49, %v683_v48  ;;  %v801_v12 = vmul.f32 0.9, %v683_v48 }
 0x1ae   :  { %v2602_v55 = vpop.f32.mrf.mxu0 }
 0x1af   :  { %v806_v57 = vmul.f32 %v805_v54, %v804_v53 }
 0x1b1   :  { %v2260_v58 = vadd.f32 -0.5, %v806_v57  ;;  %v922_v22 = vmul.f32 0.85, %v806_v57 }
 0x1b3   :  { %vm917_vm10 = vcmp.gt.f32.partialorder %v2260_v58, 0.0 }
 0x1b4   :  { %v2261_v61 = vsel %vm917_vm10, 1.0, %v2893_v1  ;;  %vm2266_vm11 = vmpackc.low %vm917_vm10, %vm917_vm10 }
 0x1b5   :  { %v927_v62 = vcombine.high %v2261_v61, %v2261_v61  ;;  %v934_v63 = vrot.slane %v2261_v61, %v3150_v60  ;;  %2660 = vmatmul.mubr.msk.bf16.vlgmr.msra.gmra.mxu1 %vm2266_vm11, %v2896_v39  ;;  %v924_v27 = vsub.f32 1.0, %v2261_v61 }
 0x1b6   :  { %2684 = vmatpush3.bf16.msra.mxu1 %v2928_v2  ;;  %2699 = vmatprep.mubr.msk.bf16.mxu1 %vm2894_vm1, %v2893_v1 }
 0x1b7   :  { %v941_v42 = vrot.slane %v927_v62, %v3150_v60  ;;  %v942_v0 = vcombine.high %v934_v63, %v934_v63  ;;  %v950_v3 = vrot.slane %v934_v63, %v3150_v60  ;;  %2262 = vst.sshfl [vmem:[#allocation4 + $0x5] sm:$0x1 pattern:$0x73625140] %v934_v63  ;;  %2685 = vmatprep.subr.bf16.mxu1 %v2893_v1 }
 0x1b9   :  { %v943_v6 = vcombine.high %v941_v42, %v941_v42  ;;  %v957_v8 = vrot.slane %v941_v42, %v3150_v60  ;;  %v964_v9 = vrot.slane %v942_v0, %v3150_v60  ;;  %v972_v10 = vcombine.high %v950_v3, %v950_v3  ;;  %2263 = vst.sshfl [vmem:[#allocation4 + $0x15] sm:$0x1 pattern:$0x73625140] %v942_v0 }
 0x1ba   :  { %2264 = vst.sshfl [vmem:[#allocation4 + $0x45] sm:$0x1 pattern:$0x73625140] %v941_v42  ;;  %2686 = vmatpush3.bf16.msra.mxu1 %v2937_v5 }
 0x1bb   :  { %v790_v11 = vpop.f32.mrf.mxu1  ;;  %v971_v14 = vrot.slane %v943_v6, %v3150_v60  ;;  %v973_v15 = vcombine.high %v957_v8, %v957_v8  ;;  %v974_v40 = vcombine.high %v964_v9, %v964_v9  ;;  %986 = vst [vmem:[#allocation4 + $0x25] sm:$0x1] %v972_v10  ;;  %2265 = vst.sshfl [vmem:[#allocation4 + $0x55] sm:$0x1 pattern:$0x73625140] %v943_v6  ;;  %2687 = vmatprep.subr.bf16.mxu1 %v2893_v1 }
 0x1bc   :  { %v796_v17 = vadd.f32 %v790_v11, %v3136_v45 }
 0x1bd   :  { %v2621_v19 = vpop.f32.mrf.mxu1  ;;  %v975_v20 = vcombine.high %v971_v14, %v971_v14  ;;  %987 = vst [vmem:[#allocation4 + $0x35] sm:$0x1] %v974_v40  ;;  %990 = vst [vmem:[#allocation4 + $0x65] sm:$0x1] %v973_v15 }
 0x1be   :  { %v802_v21 = vadd.f32 %v801_v12, %v796_v17  ;;  %2688 = vmatpush3.bf16.msra.mxu1 %v2946_v7 }
 0x1bf   :  { %v793_v23 = vpop.f32.mrf.mxu1  ;;  %991 = vst [vmem:[#allocation4 + $0x75] sm:$0x1] %v975_v20  ;;  %2689 = vmatprep.subr.bf16.mxu1 %v2893_v1 }
 0x1c0   :  { %v923_v25 = vadd.f32 %v922_v22, %v802_v21  ;;  %v920_v57 = vmul.f32 0.9, %v802_v21 }
 0x1c1   :  { %v2622_v28 = vpop.f32.mrf.mxu1 }
 0x1c2   :  { %v925_v29 = vmul.f32 %v924_v27, %v923_v25  ;;  %2690 = vmatpush3.bf16.msra.mxu1 %v2975_v16 }
 0x1c3   :  { %2691 = vmatprep.subr.bf16.mxu1 %v2893_v1 }
 0x1c4   :  { %v2268_v45 = vadd.f32 -0.5, %v925_v29  ;;  %v1041_v62 = vmul.f32 0.85, %v925_v29 }
 0x1c6   :  { %vm1036_vm12 = vcmp.gt.f32.partialorder %v2268_v45, 0.0  ;;  %2692 = vmatpush3.bf16.msra.mxu1 %v2985_v18 }
 0x1c7   :  { %v2269_v30 = vsel %vm1036_vm12, 1.0, %v2893_v1  ;;  %vm2274_vm13 = vmpackc.low %vm1036_vm12, %vm1036_vm12  ;;  %2693 = vmatprep.subr.bf16.mxu1 %v2893_v1 }
 0x1c8   :  { %v1046_v31 = vcombine.high %v2269_v30, %v2269_v30  ;;  %v1053_v33 = vrot.slane %v2269_v30, %v3150_v60  ;;  %2680 = vmatmul.mubr.msk.bf16.vlgmr.msra.gmra.mxu0 %vm2274_vm13, %v2896_v39  ;;  %v1043_v0 = vsub.f32 1.0, %v2269_v30 }
 0x1c9   :  { %2704 = vmatpush3.bf16.msra.mxu0 %v2928_v2  ;;  %2719 = vmatprep.mubr.msk.bf16.mxu0 %vm2894_vm1, %v2893_v1 }
 0x1ca   :  { %v1060_v34 = vrot.slane %v1046_v31, %v3150_v60  ;;  %v1061_v35 = vcombine.high %v1053_v33, %v1053_v33  ;;  %v1069_v36 = vrot.slane %v1053_v33, %v3150_v60  ;;  %2270 = vst.sshfl [vmem:[#allocation4 + $0x6] sm:$0x1 pattern:$0x73625140] %v1053_v33  ;;  %2705 = vmatprep.subr.bf16.mxu0 %v2893_v1 }
 0x1cb   :  { %2694 = vmatpush3.bf16.msra.mxu1 %v3007_v24 }
 0x1cc   :  { %v1062_v37 = vcombine.high %v1060_v34, %v1060_v34  ;;  %v1076_v38 = vrot.slane %v1060_v34, %v3150_v60  ;;  %v1083_v41 = vrot.slane %v1061_v35, %v3150_v60  ;;  %v1091_v43 = vcombine.high %v1069_v36, %v1069_v36  ;;  %2271 = vst.sshfl [vmem:[#allocation4 + $0x16] sm:$0x1 pattern:$0x73625140] %v1061_v35 }
 0x1cd   :  { %2272 = vst.sshfl [vmem:[#allocation4 + $0x46] sm:$0x1 pattern:$0x73625140] %v1060_v34  ;;  %2695 = vmatprep.subr.bf16.mxu1 %v2893_v1  ;;  %2706 = vmatpush3.bf16.msra.mxu0 %v2937_v5 }
 0x1ce   :  { %v1090_v48 = vrot.slane %v1062_v37, %v3150_v60  ;;  %v1092_v49 = vcombine.high %v1076_v38, %v1076_v38  ;;  %v1093_v50 = vcombine.high %v1083_v41, %v1083_v41  ;;  %1105 = vst [vmem:[#allocation4 + $0x26] sm:$0x1] %v1091_v43  ;;  %2273 = vst.sshfl [vmem:[#allocation4 + $0x56] sm:$0x1 pattern:$0x73625140] %v1062_v37  ;;  %2707 = vmatprep.subr.bf16.mxu0 %v2893_v1  ;;  %v909_v53 = vpop.f32.mrf.mxu0 }
 0x1cf   :  { %2696 = vmatpush3.bf16.msra.mxu1 %v3017_v26  ;;  %v915_v55 = vadd.f32 %v909_v53, %v3140_v47  ;;  %v3344_v53 = vld [vmem:[%s3541_s2 + $0x30] sm:$0xff]  }
 0x1d0   :  { %v1094_v54 = vcombine.high %v1090_v48, %v1090_v48  ;;  %1106 = vst [vmem:[#allocation4 + $0x36] sm:$0x1] %v1093_v50  ;;  %1109 = vst [vmem:[#allocation4 + $0x66] sm:$0x1] %v1092_v49  ;;  %2697 = vmatprep.subr.bf16.mxu1 %v2893_v1  ;;  %v2641_v58 = vpop.f32.mrf.mxu0 }
 0x1d1   :  { %2708 = vmatpush3.bf16.msra.mxu0 %v2946_v7  ;;  %v3281_v61 = vadd.f32 %v920_v57, %v915_v55 }
 0x1d2   :  { %1110 = vst [vmem:[#allocation4 + $0x76] sm:$0x1] %v1094_v54  ;;  %2709 = vmatprep.subr.bf16.mxu0 %v2893_v1  ;;  %v912_v63 = vpop.f32.mrf.mxu0 }
 0x1d3   :  { %2698 = vmatpush3.bf16.msra.mxu1 %v3039_v32  ;;  %v1042_v42 = vadd.f32 %v1041_v62, %v3281_v61 }
 0x1d4   :  { %2723 = vmatprep.subr.bf16.mxu1 %v2893_v1  ;;  %v2642_v47 = vpop.f32.mrf.mxu0 }
 0x1d5   :  { %2710 = vmatpush3.bf16.msra.mxu0 %v2975_v16  ;;  %v1044_v3 = vmul.f32 %v1043_v0, %v1042_v42  ;;  %v3353_v47 = vld [vmem:[%s3541_s2 + $0x28] sm:$0xff]  }
 0x1d6   :  { %2711 = vmatprep.subr.bf16.mxu0 %v2893_v1 }
 0x1d7   :  { %v2276_v6 = vadd.f32 -0.5, %v1044_v3  ;;  %v1160_v27 = vmul.f32 0.85, %v1044_v3 }
 0x1d9   :  { %2712 = vmatpush3.bf16.msra.mxu0 %v2985_v18  ;;  %vm1155_vm14 = vcmp.gt.f32.partialorder %v2276_v6, 0.0 }
 0x1da   :  { %2713 = vmatprep.subr.bf16.mxu0 %v2893_v1  ;;  %v2277_v8 = vsel %vm1155_vm14, 1.0, %v2893_v1  ;;  %vm2282_vm15 = vmpackc.low %vm1155_vm14, %vm1155_vm14 }
 0x1db   :  { %v1165_v9 = vcombine.high %v2277_v8, %v2277_v8  ;;  %v1172_v10 = vrot.slane %v2277_v8, %v3150_v60  ;;  %2700 = vmatmul.mubr.msk.bf16.vlgmr.msra.gmra.mxu1 %vm2282_vm15, %v2896_v39  ;;  %v1162_v45 = vsub.f32 1.0, %v2277_v8 }
 0x1dc   :  { %2724 = vmatpush3.bf16.msra.mxu1 %v2928_v2  ;;  %2739 = vmatprep.mubr.msk.bf16.mxu1 %vm2894_vm1, %v2893_v1 }
 0x1dd   :  { %2714 = vmatpush3.bf16.msra.mxu0 %v3007_v24  ;;  %v1179_v11 = vrot.slane %v1165_v9, %v3150_v60  ;;  %v1180_v12 = vcombine.high %v1172_v10, %v1172_v10  ;;  %v1188_v14 = vrot.slane %v1172_v10, %v3150_v60  ;;  %2278 = vst.sshfl [vmem:[#allocation4 + $0x7] sm:$0x1 pattern:$0x73625140] %v1172_v10  ;;  %v3360_v9 = vld [vmem:[%s3541_s2 + $0x20] sm:$0xff]  }
 0x1de   :  { %2725 = vmatprep.subr.bf16.mxu1 %v2893_v1  ;;  %2715 = vmatprep.subr.bf16.mxu0 %v2893_v1 }
 0x1df   :  { %v1181_v15 = vcombine.high %v1179_v11, %v1179_v11  ;;  %v1195_v40 = vrot.slane %v1179_v11, %v3150_v60  ;;  %v1202_v2 = vrot.slane %v1180_v12, %v3150_v60  ;;  %v1210_v17 = vcombine.high %v1188_v14, %v1188_v14  ;;  %2279 = vst.sshfl [vmem:[#allocation4 + $0x17] sm:$0x1 pattern:$0x73625140] %v1180_v12 }
 0x1e0   :  { %2280 = vst.sshfl [vmem:[#allocation4 + $0x47] sm:$0x1 pattern:$0x73625140] %v1179_v11  ;;  %2726 = vmatpush3.bf16.msra.mxu1 %v2937_v5 }
 0x1e1   :  { %2716 = vmatpush3.bf16.msra.mxu0 %v3017_v26  ;;  %v1209_v19 = vrot.slane %v1181_v15, %v3150_v60  ;;  %v1211_v20 = vcombine.high %v1195_v40, %v1195_v40  ;;  %v1212_v21 = vcombine.high %v1202_v2, %v1202_v2  ;;  %1224 = vst [vmem:[#allocation4 + $0x27] sm:$0x1] %v1210_v17  ;;  %2281 = vst.sshfl [vmem:[#allocation4 + $0x57] sm:$0x1 pattern:$0x73625140] %v1181_v15 }
 0x1e2   :  { %2727 = vmatprep.subr.bf16.mxu1 %v2893_v1  ;;  %2717 = vmatprep.subr.bf16.mxu0 %v2893_v1 }
 0x1e3   :  { %v1213_v22 = vcombine.high %v1209_v19, %v1209_v19  ;;  %1225 = vst [vmem:[#allocation4 + $0x37] sm:$0x1] %v1212_v21  ;;  %1228 = vst [vmem:[#allocation4 + $0x67] sm:$0x1] %v1211_v20 }
 0x1e4   :  { %2728 = vmatpush3.bf16.msra.mxu1 %v2946_v7 }
 0x1e5   :  { %2718 = vmatpush3.bf16.msra.mxu0 %v3039_v32  ;;  %1229 = vst [vmem:[#allocation4 + $0x77] sm:$0x1] %v1213_v22  ;;  %2729 = vmatprep.subr.bf16.mxu1 %v2893_v1 }
 0x1e6   :  { %2743 = vmatprep.subr.bf16.mxu0 %v2893_v1 }
 0x1e8   :  { %2730 = vmatpush3.bf16.msra.mxu1 %v2975_v16  ;;  %v1039_v16 = vmul.f32 0.9, %v3281_v61 }
 0x1e9   :  { %2731 = vmatprep.subr.bf16.mxu1 %v2893_v1 }
 0x1ec   :  { %2732 = vmatpush3.bf16.msra.mxu1 %v2985_v18 }
 0x1ed   :  { %2733 = vmatprep.subr.bf16.mxu1 %v2893_v1 }
 0x1f0   :  { %2734 = vmatpush3.bf16.msra.mxu1 %v3007_v24 }
 0x1f1   :  { %2735 = vmatprep.subr.bf16.mxu1 %v2893_v1 }
 0x1f4   :  { %2736 = vmatpush3.bf16.msra.mxu1 %v3017_v26 }
 0x1f5   :  { %2737 = vmatprep.subr.bf16.mxu1 %v2893_v1 }
 0x1f8   :  { %2738 = vmatpush3.bf16.msra.mxu1 %v3039_v32 }
 0x1f9   :  { %2763 = vmatprep.subr.bf16.mxu1 %v2893_v1 }
 0x275   :  { %v1028_v5 = vpop.f32.mrf.mxu1 }
 0x276   :  { %v1034_v7 = vadd.f32 %v3134_v44, %v1028_v5  ;;  %v3331_v44 = vld [vmem:[%s3541_s2 + $0x38] sm:$0xff]  }
 0x277   :  { %v2661_v23 = vpop.f32.mrf.mxu1 }
 0x278   :  { %v1040_v25 = vadd.f32 %v1039_v16, %v1034_v7  ;;  %v3385_v7 = vld [vmem:[%s3541_s2 + $0x8] sm:$0xff]  }
 0x279   :  { %v1031_v28 = vpop.f32.mrf.mxu1 }
 0x27a   :  { %v1161_v29 = vadd.f32 %v1160_v27, %v1040_v25  ;;  %v1158_v50 = vmul.f32 0.9, %v1040_v25 }
 0x27b   :  { %v2662_v30 = vpop.f32.mrf.mxu1 }
 0x27c   :  { %v1163_v31 = vmul.f32 %v1162_v45, %v1161_v29  ;;  %v3397_v30 = vld [vmem:[%s3541_s2] sm:$0xff]  }
 0x27e   :  { %v2284_v26 = vadd.f32 -0.5, %v1163_v31  ;;  %v1279_v42 = vmul.f32 0.85, %v1163_v31 }
 0x280   :  { %vm1274_vm0 = vcmp.gt.f32.partialorder %v2284_v26, 0.0 }
 0x281   :  { %v2285_v33 = vsel %vm1274_vm0, 1.0, %v2893_v1  ;;  %vm2290_vm2 = vmpackc.low %vm1274_vm0, %vm1274_vm0 }
 0x282   :  { %v1284_v32 = vcombine.high %v2285_v33, %v2285_v33  ;;  %v1291_v34 = vrot.slane %v2285_v33, %v3150_v60  ;;  %2720 = vmatmul.mubr.msk.bf16.vlgmr.msra.gmra.mxu0 %vm2290_vm2, %v2896_v39  ;;  %v1281_v6 = vsub.f32 1.0, %v2285_v33 }
 0x283   :  { %2744 = vmatpush3.bf16.msra.mxu0 %v3331_v44  ;;  %2759 = vmatprep.mubr.msk.bf16.mxu0 %vm2894_vm1, %v2893_v1 }
 0x284   :  { %v1298_v35 = vrot.slane %v1284_v32, %v3150_v60  ;;  %v1299_v36 = vcombine.high %v1291_v34, %v1291_v34  ;;  %v1307_v37 = vrot.slane %v1291_v34, %v3150_v60  ;;  %2286 = vst.sshfl [vmem:[#allocation4 + $0x8] sm:$0x1 pattern:$0x73625140] %v1291_v34  ;;  %2745 = vmatprep.subr.bf16.mxu0 %v2893_v1  ;;  %v3407_v34 = vld [vmem:[%s3541_s2 + $0x18] sm:$0xff]  }
 0x286   :  { %v1300_v38 = vcombine.high %v1298_v35, %v1298_v35  ;;  %v1314_v41 = vrot.slane %v1298_v35, %v3150_v60  ;;  %v1321_v43 = vrot.slane %v1299_v36, %v3150_v60  ;;  %v1329_v48 = vcombine.high %v1307_v37, %v1307_v37  ;;  %2287 = vst.sshfl [vmem:[#allocation4 + $0x18] sm:$0x1 pattern:$0x73625140] %v1299_v36 }
 0x287   :  { %2288 = vst.sshfl [vmem:[#allocation4 + $0x48] sm:$0x1 pattern:$0x73625140] %v1298_v35  ;;  %2746 = vmatpush3.bf16.msra.mxu0 %v3344_v53 }
 0x288   :  { %v1147_v49 = vpop.f32.mrf.mxu0  ;;  %v1328_v54 = vrot.slane %v1300_v38, %v3150_v60  ;;  %v1330_v55 = vcombine.high %v1314_v41, %v1314_v41  ;;  %v1331_v57 = vcombine.high %v1321_v43, %v1321_v43  ;;  %1343 = vst [vmem:[#allocation4 + $0x28] sm:$0x1] %v1329_v48  ;;  %2289 = vst.sshfl [vmem:[#allocation4 + $0x58] sm:$0x1 pattern:$0x73625140] %v1300_v38  ;;  %2747 = vmatprep.subr.bf16.mxu0 %v2893_v1 }
 0x289   :  { %v1153_v58 = vadd.f32 %v3138_v46, %v1147_v49  ;;  %v3418_v38 = vld [vmem:[%s3541_s2 + $0x10] sm:$0xff]   ;;  %s2898_s2 = smov [#allocation4]  }
 0x28a   :  { %v2681_v61 = vpop.f32.mrf.mxu0  ;;  %v1332_v62 = vcombine.high %v1328_v54, %v1328_v54  ;;  %1344 = vst [vmem:[#allocation4 + $0x38] sm:$0x1] %v1331_v57  ;;  %1347 = vst [vmem:[#allocation4 + $0x68] sm:$0x1] %v1330_v55  ;;  %s2190_s25 = sshll.u32 %s2898_s2, 4  ;;  %s2191_s25 = int_to_ptr.vmem [resolvable:$true] %s2190_s25 }
 0x28b   :  { %v1159_v63 = vadd.f32 %v1158_v50, %v1153_v58  ;;  %2748 = vmatpush3.bf16.msra.mxu0 %v3353_v47  ;;  %s2871_s26 = scalar_lea.vmem %s2191_s25, 2048  ;;  %p2876_p1 = scmp.lt.s32.totalorder %s2191_s25, %s2191_s25 }
 0x28c   :  { %v1150_v0 = vpop.f32.mrf.mxu0  ;;  %1348 = vst [vmem:[#allocation4 + $0x78] sm:$0x1] %v1332_v62  ;;  %2749 = vmatprep.subr.bf16.mxu0 %v2893_v1  ;;  %p2872_p0 = scmp.ne.s32.totalorder %s2191_s25, %s2871_s26  ;;  %p2877_p2 = scmp.lt.s32.totalorder %s2871_s26, %s2871_s26 }
 0x28d   :  { %v1280_v3 = vadd.f32 %v1279_v42, %v1159_v63  ;;  %v1277_v25 = vmul.f32 0.9, %v1159_v63 }
 0x28e   :  { %v2682_v46 = vpop.f32.mrf.mxu0  ;;  %p2878_p3 = por %p2877_p2, %p2876_p1 }
 0x28f   :  { %v1282_v8 = vmul.f32 %v1281_v6, %v1280_v3  ;;  %2750 = vmatpush3.bf16.msra.mxu0 %v3360_v9 }
 0x290   :  { %2751 = vmatprep.subr.bf16.mxu0 %v2893_v1  ;;  %p2879_p4 = pnand %p2878_p3, %p2872_p0 }
 0x291   :  { %v2292_v10 = vadd.f32 -0.5, %v1282_v8  ;;  %v1398_v29 = vmul.f32 0.85, %v1282_v8 }
 0x293   :  { %vm1393_vm3 = vcmp.gt.f32.partialorder %v2292_v10, 0.0  ;;  %2752 = vmatpush3.bf16.msra.mxu0 %v2985_v18 }
 0x294   :  { %v2293_v11 = vsel %vm1393_vm3, 1.0, %v2893_v1  ;;  %vm2298_vm4 = vmpackc.low %vm1393_vm3, %vm1393_vm3  ;;  %2753 = vmatprep.subr.bf16.mxu0 %v2893_v1 }
 0x295   :  { %v1403_v12 = vcombine.high %v2293_v11, %v2293_v11  ;;  %v1410_v14 = vrot.slane %v2293_v11, %v3150_v60  ;;  %2740 = vmatmul.mubr.msk.bf16.vlgmr.msra.gmra.mxu1 %vm2298_vm4, %v2896_v39  ;;  %v1400_v31 = vsub.f32 1.0, %v2293_v11 }
 0x296   :  { %2764 = vmatpush3.bf16.msra.mxu1 %v3331_v44  ;;  %2779 = vmatprep.mubr.msk.bf16.mxu1 %vm2894_vm1, %v2893_v1 }
 0x297   :  { %v1417_v15 = vrot.slane %v1403_v12, %v3150_v60  ;;  %v1418_v40 = vcombine.high %v1410_v14, %v1410_v14  ;;  %v1426_v2 = vrot.slane %v1410_v14, %v3150_v60  ;;  %2294 = vst.sshfl [vmem:[#allocation4 + $0x9] sm:$0x1 pattern:$0x73625140] %v1410_v14  ;;  %2765 = vmatprep.subr.bf16.mxu1 %v2893_v1 }
 0x298   :  { %2754 = vmatpush3.bf16.msra.mxu0 %v3007_v24 }
 0x299   :  { %v1419_v18 = vcombine.high %v1417_v15, %v1417_v15  ;;  %v1433_v17 = vrot.slane %v1417_v15, %v3150_v60  ;;  %v1440_v19 = vrot.slane %v1418_v40, %v3150_v60  ;;  %v1448_v20 = vcombine.high %v1426_v2, %v1426_v2  ;;  %2295 = vst.sshfl [vmem:[#allocation4 + $0x19] sm:$0x1 pattern:$0x73625140] %v1418_v40 }
 0x29a   :  { %2296 = vst.sshfl [vmem:[#allocation4 + $0x49] sm:$0x1 pattern:$0x73625140] %v1417_v15  ;;  %2755 = vmatprep.subr.bf16.mxu0 %v2893_v1  ;;  %2766 = vmatpush3.bf16.msra.mxu1 %v3344_v53 }
 0x29b   :  { %v1447_v21 = vrot.slane %v1419_v18, %v3150_v60  ;;  %v1449_v22 = vcombine.high %v1433_v17, %v1433_v17  ;;  %v1450_v5 = vcombine.high %v1440_v19, %v1440_v19  ;;  %1462 = vst [vmem:[#allocation4 + $0x29] sm:$0x1] %v1448_v20  ;;  %2297 = vst.sshfl [vmem:[#allocation4 + $0x59] sm:$0x1 pattern:$0x73625140] %v1419_v18  ;;  %2767 = vmatprep.subr.bf16.mxu1 %v2893_v1  ;;  %v1266_v24 = vpop.f32.mrf.mxu1 }
 0x29c   :  { %2756 = vmatpush3.bf16.msra.mxu0 %v3385_v7  ;;  %v1272_v23 = vadd.f32 %v1266_v24, %v3144_v52 }
 0x29d   :  { %v1451_v16 = vcombine.high %v1447_v21, %v1447_v21  ;;  %1463 = vst [vmem:[#allocation4 + $0x39] sm:$0x1] %v1450_v5  ;;  %1466 = vst [vmem:[#allocation4 + $0x69] sm:$0x1] %v1449_v22  ;;  %2757 = vmatprep.subr.bf16.mxu0 %v2893_v1  ;;  %v2701_v27 = vpop.f32.mrf.mxu1 }
 0x29e   :  { %2768 = vmatpush3.bf16.msra.mxu1 %v3353_v47  ;;  %v3391_v28 = vadd.f32 %v1277_v25, %v1272_v23 }
 0x29f   :  { %1467 = vst [vmem:[#allocation4 + $0x79] sm:$0x1] %v1451_v16  ;;  %2769 = vmatprep.subr.bf16.mxu1 %v2893_v1  ;;  %v1269_v45 = vpop.f32.mrf.mxu1 }
 0x2a0   :  { %2758 = vmatpush3.bf16.msra.mxu0 %v3397_v30  ;;  %v1399_v52 = vadd.f32 %v1398_v29, %v3391_v28  ;;  %v1396_v0 = vmul.f32 0.9, %v3391_v28 }
 0x2a1   :  { %2783 = vmatprep.subr.bf16.mxu0 %v2893_v1  ;;  %v2702_v26 = vpop.f32.mrf.mxu1 }
 0x2a2   :  { %2770 = vmatpush3.bf16.msra.mxu1 %v3360_v9  ;;  %v1401_v33 = vmul.f32 %v1400_v31, %v1399_v52 }
 0x2a3   :  { %2771 = vmatprep.subr.bf16.mxu1 %v2893_v1 }
 0x2a4   :  { %v2300_v32 = vadd.f32 -0.5, %v1401_v33  ;;  %v1517_v46 = vmul.f32 0.85, %v1401_v33 }
 0x2a6   :  { %2772 = vmatpush3.bf16.msra.mxu1 %v3407_v34  ;;  %vm1512_vm5 = vcmp.gt.f32.partialorder %v2300_v32, 0.0 }
 0x2a7   :  { %2773 = vmatprep.subr.bf16.mxu1 %v2893_v1  ;;  %v2301_v35 = vsel %vm1512_vm5, 1.0, %v2893_v1  ;;  %vm2306_vm6 = vmpackc.low %vm1512_vm5, %vm1512_vm5 }
 0x2a8   :  { %v1522_v36 = vcombine.high %v2301_v35, %v2301_v35  ;;  %v1529_v37 = vrot.slane %v2301_v35, %v3150_v60  ;;  %2760 = vmatmul.mubr.msk.bf16.vlgmr.msra.gmra.mxu0 %vm2306_vm6, %v2896_v39  ;;  %v1519_v11 = vsub.f32 1.0, %v2301_v35 }
 0x2a9   :  { %2784 = vmatpush3.bf16.msra.mxu0 %v3331_v44  ;;  %2799 = vmatprep.mubr.msk.bf16.mxu0 %vm2894_vm1, %v2893_v1 }
 0x2aa   :  { %2774 = vmatpush3.bf16.msra.mxu1 %v3418_v38  ;;  %v1536_v41 = vrot.slane %v1522_v36, %v3150_v60  ;;  %v1537_v43 = vcombine.high %v1529_v37, %v1529_v37  ;;  %v1545_v48 = vrot.slane %v1529_v37, %v3150_v60  ;;  %2302 = vst.sshfl [vmem:[#allocation4 + $0xa] sm:$0x1 pattern:$0x73625140] %v1529_v37 }
 0x2ab   :  { %2785 = vmatprep.subr.bf16.mxu0 %v2893_v1  ;;  %2775 = vmatprep.subr.bf16.mxu1 %v2893_v1 }
 0x2ac   :  { %v1538_v49 = vcombine.high %v1536_v41, %v1536_v41  ;;  %v1552_v50 = vrot.slane %v1536_v41, %v3150_v60  ;;  %v1559_v54 = vrot.slane %v1537_v43, %v3150_v60  ;;  %v1567_v55 = vcombine.high %v1545_v48, %v1545_v48  ;;  %2303 = vst.sshfl [vmem:[#allocation4 + $0x1a] sm:$0x1 pattern:$0x73625140] %v1537_v43 }
 0x2ad   :  { %2304 = vst.sshfl [vmem:[#allocation4 + $0x4a] sm:$0x1 pattern:$0x73625140] %v1536_v41  ;;  %2786 = vmatpush3.bf16.msra.mxu0 %v3344_v53 }
 0x2ae   :  { %2776 = vmatpush3.bf16.msra.mxu1 %v3385_v7  ;;  %v1566_v57 = vrot.slane %v1538_v49, %v3150_v60  ;;  %v1568_v58 = vcombine.high %v1552_v50, %v1552_v50  ;;  %v1569_v61 = vcombine.high %v1559_v54, %v1559_v54  ;;  %1581 = vst [vmem:[#allocation4 + $0x2a] sm:$0x1] %v1567_v55  ;;  %2305 = vst.sshfl [vmem:[#allocation4 + $0x5a] sm:$0x1 pattern:$0x73625140] %v1538_v49 }
 0x2af   :  { %2787 = vmatprep.subr.bf16.mxu0 %v2893_v1  ;;  %2777 = vmatprep.subr.bf16.mxu1 %v2893_v1 }
 0x2b0   :  { %v1570_v62 = vcombine.high %v1566_v57, %v1566_v57  ;;  %1582 = vst [vmem:[#allocation4 + $0x3a] sm:$0x1] %v1569_v61  ;;  %1585 = vst [vmem:[#allocation4 + $0x6a] sm:$0x1] %v1568_v58 }
 0x2b1   :  { %2788 = vmatpush3.bf16.msra.mxu0 %v3353_v47 }
 0x2b2   :  { %2778 = vmatpush3.bf16.msra.mxu1 %v3397_v30  ;;  %1586 = vst [vmem:[#allocation4 + $0x7a] sm:$0x1] %v1570_v62  ;;  %2789 = vmatprep.subr.bf16.mxu0 %v2893_v1 }
 0x2b3   :  { %2803 = vmatprep.subr.bf16.mxu1 %v2893_v1 }
 0x2b5   :  { %2790 = vmatpush3.bf16.msra.mxu0 %v3360_v9 }
 0x2b6   :  { %2791 = vmatprep.subr.bf16.mxu0 %v2893_v1 }
 0x2b9   :  { %2792 = vmatpush3.bf16.msra.mxu0 %v3407_v34 }
 0x2ba   :  { %2793 = vmatprep.subr.bf16.mxu0 %v2893_v1 }
 0x2bd   :  { %2794 = vmatpush3.bf16.msra.mxu0 %v3418_v38 }
 0x2be   :  { %2795 = vmatprep.subr.bf16.mxu0 %v2893_v1 }
 0x2c1   :  { %2796 = vmatpush3.bf16.msra.mxu0 %v3385_v7 }
 0x2c2   :  { %2797 = vmatprep.subr.bf16.mxu0 %v2893_v1 }
 0x2c5   :  { %2798 = vmatpush3.bf16.msra.mxu0 %v3397_v30 }
 0x2c6   :  { %2823 = vmatprep.subr.bf16.mxu0 %v2893_v1 }
 0x342   :  { %v1385_v63 = vpop.f32.mrf.mxu0 }
 0x343   :  { %v1391_v42 = vadd.f32 %v1385_v63, %v3148_v59 }
 0x344   :  { %v2721_v3 = vpop.f32.mrf.mxu0 }
 0x345   :  { %v1397_v6 = vadd.f32 %v1396_v0, %v1391_v42 }
 0x346   :  { %v1388_v8 = vpop.f32.mrf.mxu0 }
 0x347   :  { %v1518_v10 = vadd.f32 %v1517_v46, %v1397_v6  ;;  %v1515_v16 = vmul.f32 0.9, %v1397_v6 }
 0x348   :  { %v2722_v12 = vpop.f32.mrf.mxu0 }
 0x349   :  { %v1520_v14 = vmul.f32 %v1519_v11, %v1518_v10 }
 0x34b   :  { %v2308_v15 = vadd.f32 -0.5, %v1520_v14  ;;  %v1636_v31 = vmul.f32 0.85, %v1520_v14 }
 0x34d   :  { %vm1631_vm7 = vcmp.gt.f32.partialorder %v2308_v15, 0.0 }
 0x34e   :  { %v2309_v40 = vsel %vm1631_vm7, 1.0, %v2893_v1  ;;  %vm2314_vm8 = vmpackc.low %vm1631_vm7, %vm1631_vm7 }
 0x34f   :  { %v1641_v2 = vcombine.high %v2309_v40, %v2309_v40  ;;  %v1648_v18 = vrot.slane %v2309_v40, %v3150_v60  ;;  %2780 = vmatmul.mubr.msk.bf16.vlgmr.msra.gmra.mxu1 %vm2314_vm8, %v2896_v39  ;;  %v1638_v32 = vsub.f32 1.0, %v2309_v40 }
 0x350   :  { %2804 = vmatpush3.bf16.msra.mxu1 %v3331_v44  ;;  %2819 = vmatprep.mubr.msk.bf16.mxu1 %vm2894_vm1, %v2893_v1 }
 0x351   :  { %v1655_v59 = vrot.slane %v1641_v2, %v3150_v60  ;;  %v1656_v17 = vcombine.high %v1648_v18, %v1648_v18  ;;  %v1664_v19 = vrot.slane %v1648_v18, %v3150_v60  ;;  %2310 = vst.sshfl [vmem:[#allocation4 + $0xb] sm:$0x1 pattern:$0x73625140] %v1648_v18  ;;  %2805 = vmatprep.subr.bf16.mxu1 %v2893_v1 }
 0x353   :  { %v1657_v20 = vcombine.high %v1655_v59, %v1655_v59  ;;  %v1671_v21 = vrot.slane %v1655_v59, %v3150_v60  ;;  %v1678_v22 = vrot.slane %v1656_v17, %v3150_v60  ;;  %v1686_v5 = vcombine.high %v1664_v19, %v1664_v19  ;;  %2311 = vst.sshfl [vmem:[#allocation4 + $0x1b] sm:$0x1 pattern:$0x73625140] %v1656_v17 }
 0x354   :  { %2312 = vst.sshfl [vmem:[#allocation4 + $0x4b] sm:$0x1 pattern:$0x73625140] %v1655_v59  ;;  %2806 = vmatpush3.bf16.msra.mxu1 %v3344_v53 }
 0x355   :  { %v1504_v24 = vpop.f32.mrf.mxu1  ;;  %v1685_v23 = vrot.slane %v1657_v20, %v3150_v60  ;;  %v1687_v25 = vcombine.high %v1671_v21, %v1671_v21  ;;  %v1688_v27 = vcombine.high %v1678_v22, %v1678_v22  ;;  %1700 = vst [vmem:[#allocation4 + $0x2b] sm:$0x1] %v1686_v5  ;;  %2313 = vst.sshfl [vmem:[#allocation4 + $0x5b] sm:$0x1 pattern:$0x73625140] %v1657_v20  ;;  %2807 = vmatprep.subr.bf16.mxu1 %v2893_v1 }
 0x356   :  { %v1510_v28 = vadd.f32 %v3142_v51, %v1504_v24 }
 0x357   :  { %v2741_v29 = vpop.f32.mrf.mxu1  ;;  %v1689_v45 = vcombine.high %v1685_v23, %v1685_v23  ;;  %1701 = vst [vmem:[#allocation4 + $0x3b] sm:$0x1] %v1688_v27  ;;  %1704 = vst [vmem:[#allocation4 + $0x6b] sm:$0x1] %v1687_v25 }
 0x358   :  { %v1516_v52 = vadd.f32 %v1515_v16, %v1510_v28  ;;  %2808 = vmatpush3.bf16.msra.mxu1 %v3353_v47 }
 0x359   :  { %v1507_v26 = vpop.f32.mrf.mxu1  ;;  %1705 = vst [vmem:[#allocation4 + $0x7b] sm:$0x1] %v1689_v45  ;;  %2809 = vmatprep.subr.bf16.mxu1 %v2893_v1 }
 0x35a   :  { %v1637_v33 = vadd.f32 %v1636_v31, %v1516_v52  ;;  %v1634_v3 = vmul.f32 0.9, %v1516_v52 }
 0x35b   :  { %v2742_v35 = vpop.f32.mrf.mxu1 }
 0x35c   :  { %v1639_v36 = vmul.f32 %v1638_v32, %v1637_v33  ;;  %2810 = vmatpush3.bf16.msra.mxu1 %v3360_v9 }
 0x35d   :  { %2811 = vmatprep.subr.bf16.mxu1 %v2893_v1 }
 0x35e   :  { %v2316_v51 = vadd.f32 -0.5, %v1639_v36  ;;  %v1755_v46 = vmul.f32 0.85, %v1639_v36 }
 0x360   :  { %vm1750_vm9 = vcmp.gt.f32.partialorder %v2316_v51, 0.0  ;;  %2812 = vmatpush3.bf16.msra.mxu1 %v3407_v34 }
 0x361   :  { %v2317_v37 = vsel %vm1750_vm9, 1.0, %v2893_v1  ;;  %vm2322_vm10 = vmpackc.low %vm1750_vm9, %vm1750_vm9  ;;  %2813 = vmatprep.subr.bf16.mxu1 %v2893_v1 }
 0x362   :  { %v1760_v41 = vcombine.high %v2317_v37, %v2317_v37  ;;  %v1767_v43 = vrot.slane %v2317_v37, %v3150_v60  ;;  %2800 = vmatmul.mubr.msk.bf16.vlgmr.msra.gmra.mxu0 %vm2322_vm10, %v2896_v39  ;;  %v1757_v11 = vsub.f32 1.0, %v2317_v37 }
 0x363   :  { %2824 = vmatpush3.bf16.msra.mxu0 %v3331_v44  ;;  %2839 = vmatprep.mubr.msk.bf16.mxu0 %vm2894_vm1, %v2893_v1 }
 0x364   :  { %v1774_v48 = vrot.slane %v1760_v41, %v3150_v60  ;;  %v1775_v49 = vcombine.high %v1767_v43, %v1767_v43  ;;  %v1783_v50 = vrot.slane %v1767_v43, %v3150_v60  ;;  %2318 = vst.sshfl [vmem:[#allocation4 + $0xc] sm:$0x1 pattern:$0x73625140] %v1767_v43  ;;  %2825 = vmatprep.subr.bf16.mxu0 %v2893_v1 }
 0x365   :  { %2814 = vmatpush3.bf16.msra.mxu1 %v3418_v38 }
 0x366   :  { %v1776_v54 = vcombine.high %v1774_v48, %v1774_v48  ;;  %v1790_v55 = vrot.slane %v1774_v48, %v3150_v60  ;;  %v1797_v57 = vrot.slane %v1775_v49, %v3150_v60  ;;  %v1805_v58 = vcombine.high %v1783_v50, %v1783_v50  ;;  %2319 = vst.sshfl [vmem:[#allocation4 + $0x1c] sm:$0x1 pattern:$0x73625140] %v1775_v49 }
 0x367   :  { %2320 = vst.sshfl [vmem:[#allocation4 + $0x4c] sm:$0x1 pattern:$0x73625140] %v1774_v48  ;;  %2815 = vmatprep.subr.bf16.mxu1 %v2893_v1  ;;  %2826 = vmatpush3.bf16.msra.mxu0 %v3344_v53 }
 0x368   :  { %v1804_v44 = vrot.slane %v1776_v54, %v3150_v60  ;;  %v1806_v61 = vcombine.high %v1790_v55, %v1790_v55  ;;  %v1807_v62 = vcombine.high %v1797_v57, %v1797_v57  ;;  %1819 = vst [vmem:[#allocation4 + $0x2c] sm:$0x1] %v1805_v58  ;;  %2321 = vst.sshfl [vmem:[#allocation4 + $0x5c] sm:$0x1 pattern:$0x73625140] %v1776_v54  ;;  %2827 = vmatprep.subr.bf16.mxu0 %v2893_v1  ;;  %v1623_v63 = vpop.f32.mrf.mxu0 }
 0x369   :  { %2816 = vmatpush3.bf16.msra.mxu1 %v3385_v7  ;;  %v1629_v0 = vadd.f32 %v3146_v56, %v1623_v63 }
 0x36a   :  { %v1808_v42 = vcombine.high %v1804_v44, %v1804_v44  ;;  %1820 = vst [vmem:[#allocation4 + $0x3c] sm:$0x1] %v1807_v62  ;;  %1823 = vst [vmem:[#allocation4 + $0x6c] sm:$0x1] %v1806_v61  ;;  %2817 = vmatprep.subr.bf16.mxu1 %v2893_v1  ;;  %v2761_v53 = vpop.f32.mrf.mxu0 }
 0x36b   :  { %2828 = vmatpush3.bf16.msra.mxu0 %v3353_v47  ;;  %v1635_v6 = vadd.f32 %v1634_v3, %v1629_v0 }
 0x36c   :  { %1824 = vst [vmem:[#allocation4 + $0x7c] sm:$0x1] %v1808_v42  ;;  %2829 = vmatprep.subr.bf16.mxu0 %v2893_v1  ;;  %v1626_v8 = vpop.f32.mrf.mxu0 }
 0x36d   :  { %2818 = vmatpush3.bf16.msra.mxu1 %v3397_v30  ;;  %v1756_v10 = vadd.f32 %v1755_v46, %v1635_v6  ;;  %v1753_v16 = vmul.f32 0.9, %v1635_v6 }
 0x36e   :  { %v2762_v12 = vpop.f32.mrf.mxu0 }
 0x36f   :  { %2830 = vmatpush3.bf16.msra.mxu0 %v3360_v9  ;;  %v1758_v56 = vmul.f32 %v1757_v11, %v1756_v10 }
 0x370   :  { %2831 = vmatprep.subr.bf16.mxu0 %v2893_v1 }
 0x371   :  { %v2324_v14 = vadd.f32 -0.5, %v1758_v56  ;;  %v1874_v25 = vmul.f32 0.85, %v1758_v56 }
 0x373   :  { %2832 = vmatpush3.bf16.msra.mxu0 %v3407_v34  ;;  %vm1869_vm1 = vcmp.gt.f32.partialorder %v2324_v14, 0.0 }
 0x374   :  { %2833 = vmatprep.subr.bf16.mxu0 %v2893_v1  ;;  %v2325_v47 = vsel %vm1869_vm1, 1.0, %v2893_v1  ;;  %vm2330_vm11 = vmpackc.low %vm1869_vm1, %vm1869_vm1 }
 0x375   :  { %v1879_v15 = vcombine.high %v2325_v47, %v2325_v47  ;;  %v1886_v40 = vrot.slane %v2325_v47, %v3150_v60  ;;  %2820 = vmatmul.mubr.msk.bf16.vlgmr.msra.gmra.mxu1 %vm2330_vm11, %v2896_v39  ;;  %v1876_v29 = vsub.f32 1.0, %v2325_v47 }
 0x377   :  { %2834 = vmatpush3.bf16.msra.mxu0 %v3418_v38  ;;  %v1893_v9 = vrot.slane %v1879_v15, %v3150_v60  ;;  %v1894_v2 = vcombine.high %v1886_v40, %v1886_v40  ;;  %v1902_v18 = vrot.slane %v1886_v40, %v3150_v60  ;;  %2326 = vst.sshfl [vmem:[#allocation4 + $0xd] sm:$0x1 pattern:$0x73625140] %v1886_v40 }
 0x378   :  { %2835 = vmatprep.subr.bf16.mxu0 %v2893_v1 }
 0x379   :  { %v1895_v34 = vcombine.high %v1893_v9, %v1893_v9  ;;  %v1909_v59 = vrot.slane %v1893_v9, %v3150_v60  ;;  %v1916_v17 = vrot.slane %v1894_v2, %v3150_v60  ;;  %v1924_v19 = vcombine.high %v1902_v18, %v1902_v18  ;;  %2327 = vst.sshfl [vmem:[#allocation4 + $0x1d] sm:$0x1 pattern:$0x73625140] %v1894_v2 }
 0x37a   :  { %2328 = vst.sshfl [vmem:[#allocation4 + $0x4d] sm:$0x1 pattern:$0x73625140] %v1893_v9 }
 0x37b   :  { %2836 = vmatpush3.bf16.msra.mxu0 %v3385_v7  ;;  %v1923_v38 = vrot.slane %v1895_v34, %v3150_v60  ;;  %v1925_v20 = vcombine.high %v1909_v59, %v1909_v59  ;;  %v1926_v21 = vcombine.high %v1916_v17, %v1916_v17  ;;  %1938 = vst [vmem:[#allocation4 + $0x2d] sm:$0x1] %v1924_v19  ;;  %2329 = vst.sshfl [vmem:[#allocation4 + $0x5d] sm:$0x1 pattern:$0x73625140] %v1895_v34 }
 0x37c   :  { %2837 = vmatprep.subr.bf16.mxu0 %v2893_v1  ;;  %v332_v17 = vcombine.high %v2893_v1, %v2893_v1  ;;  %v339_v19 = vrot.slane %v2893_v1, %v3150_v60 }
 0x37d   :  { %v1927_v22 = vcombine.high %v1923_v38, %v1923_v38  ;;  %1939 = vst [vmem:[#allocation4 + $0x3d] sm:$0x1] %v1926_v21  ;;  %1942 = vst [vmem:[#allocation4 + $0x6d] sm:$0x1] %v1925_v20 }
 0x37e   :  { %v346_v38 = vrot.slane %v332_v17, %v3150_v60  ;;  %v347_v20 = vcombine.high %v339_v19, %v339_v19  ;;  %2222 = vst.sshfl [vmem:[#allocation4] sm:$0x1 pattern:$0x73625140] %v339_v19 }
 0x37f   :  { %2838 = vmatpush3.bf16.msra.mxu0 %v3397_v30  ;;  %1943 = vst [vmem:[#allocation4 + $0x7d] sm:$0x1] %v1927_v22  ;;  %2230 = vst.sshfl [vmem:[#allocation4 + $0x1] sm:$0x1 pattern:$0x73625140] %v339_v19  ;;  %v355_v22 = vrot.slane %v339_v19, %v3150_v60 }
 0x380   :  { %v348_v21 = vcombine.high %v346_v38, %v346_v38  ;;  %2224 = vst.sshfl [vmem:[#allocation4 + $0x40] sm:$0x1 pattern:$0x73625140] %v346_v38 }
 0x381   :  { %2232 = vst.sshfl [vmem:[#allocation4 + $0x41] sm:$0x1 pattern:$0x73625140] %v346_v38 }
 0x382   :  { %2223 = vst.sshfl [vmem:[#allocation4 + $0x10] sm:$0x1 pattern:$0x73625140] %v347_v20 }
 0x383   :  { %2225 = vst.sshfl [vmem:[#allocation4 + $0x50] sm:$0x1 pattern:$0x73625140] %v348_v21 }
 0x384   :  { %2231 = vst.sshfl [vmem:[#allocation4 + $0x11] sm:$0x1 pattern:$0x73625140] %v347_v20 }
 0x385   :  { %2233 = vst.sshfl [vmem:[#allocation4 + $0x51] sm:$0x1 pattern:$0x73625140] %v348_v21 }
 0x40f   :  { %v1742_v5 = vpop.f32.mrf.mxu1 }
 0x410   :  { %v1748_v24 = vadd.f32 %v1742_v5, %v3153_v4  ;;  %v362_v5 = vrot.slane %v346_v38, %v3150_v60 }
 0x411   :  { %v2781_v23 = vpop.f32.mrf.mxu1 }
 0x412   :  { %v1754_v7 = vadd.f32 %v1753_v16, %v1748_v24  ;;  %v369_v24 = vrot.slane %v347_v20, %v3150_v60  ;;  %v376_v16 = vrot.slane %v348_v21, %v3150_v60  ;;  %v378_v23 = vcombine.high %v362_v5, %v362_v5 }
 0x413   :  { %v1745_v27 = vpop.f32.mrf.mxu1 }
 0x414   :  { %v1875_v28 = vadd.f32 %v1874_v25, %v1754_v7  ;;  %v1872_v48 = vmul.f32 0.9, %v1754_v7  ;;  %v379_v7 = vcombine.high %v369_v24, %v369_v24  ;;  %v380_v25 = vcombine.high %v376_v16, %v376_v16  ;;  %395 = vst [vmem:[#allocation4 + $0x60] sm:$0x1] %v378_v23  ;;  %514 = vst [vmem:[#allocation4 + $0x61] sm:$0x1] %v378_v23 }
 0x415   :  { %v2782_v45 = vpop.f32.mrf.mxu1 }
 0x416   :  { %v1877_v52 = vmul.f32 %v1876_v29, %v1875_v28  ;;  %392 = vst [vmem:[#allocation4 + $0x30] sm:$0x1] %v379_v7  ;;  %396 = vst [vmem:[#allocation4 + $0x70] sm:$0x1] %v380_v25 }
 0x417   :  { %511 = vst [vmem:[#allocation4 + $0x31] sm:$0x1] %v379_v7  ;;  %515 = vst [vmem:[#allocation4 + $0x71] sm:$0x1] %v380_v25 }
 0x418   :  { %v2332_v31 = vadd.f32 -0.5, %v1877_v52  ;;  %v1993_v44 = vmul.f32 0.85, %v1877_v52 }
 0x41a   :  { %vm1988_vm12 = vcmp.gt.f32.partialorder %v2332_v31, 0.0 }
 0x41b   :  { %v2333_v26 = vsel %vm1988_vm12, 1.0, %v2893_v1  ;;  %vm2338_vm13 = vmpackc.low %vm1988_vm12, %vm1988_vm12 }
 0x41c   :  { %v1998_v33 = vcombine.high %v2333_v26, %v2333_v26  ;;  %v2005_v30 = vrot.slane %v2333_v26, %v3150_v60  ;;  %2840 = vmatmul.mubr.msk.bf16.vlgmr.msra.gmra.mxu0 %vm2338_vm13, %v2896_v39  ;;  %v1995_v63 = vsub.f32 1.0, %v2333_v26 }
 0x41e   :  { %v2012_v4 = vrot.slane %v1998_v33, %v3150_v60  ;;  %v2013_v32 = vcombine.high %v2005_v30, %v2005_v30  ;;  %v2021_v35 = vrot.slane %v2005_v30, %v3150_v60  ;;  %2334 = vst.sshfl [vmem:[#allocation4 + $0xe] sm:$0x1 pattern:$0x73625140] %v2005_v30 }
 0x420   :  { %v2014_v36 = vcombine.high %v2012_v4, %v2012_v4  ;;  %v2028_v51 = vrot.slane %v2012_v4, %v3150_v60  ;;  %v2035_v37 = vrot.slane %v2013_v32, %v3150_v60  ;;  %v2043_v41 = vcombine.high %v2021_v35, %v2021_v35  ;;  %2335 = vst.sshfl [vmem:[#allocation4 + $0x1e] sm:$0x1 pattern:$0x73625140] %v2013_v32 }
 0x421   :  { %2336 = vst.sshfl [vmem:[#allocation4 + $0x4e] sm:$0x1 pattern:$0x73625140] %v2012_v4 }
 0x422   :  { %v1861_v43 = vpop.f32.mrf.mxu0  ;;  %v2042_v49 = vrot.slane %v2014_v36, %v3150_v60  ;;  %v2044_v50 = vcombine.high %v2028_v51, %v2028_v51  ;;  %v2045_v39 = vcombine.high %v2035_v37, %v2035_v37  ;;  %2057 = vst [vmem:[#allocation4 + $0x2e] sm:$0x1] %v2043_v41  ;;  %2337 = vst.sshfl [vmem:[#allocation4 + $0x5e] sm:$0x1 pattern:$0x73625140] %v2014_v36 }
 0x423   :  { %v1867_v54 = vadd.f32 %v1861_v43, %v3163_v13 }
 0x424   :  { %v2801_v55 = vpop.f32.mrf.mxu0  ;;  %v2046_v57 = vcombine.high %v2042_v49, %v2042_v49  ;;  %2058 = vst [vmem:[#allocation4 + $0x3e] sm:$0x1] %v2045_v39  ;;  %2061 = vst [vmem:[#allocation4 + $0x6e] sm:$0x1] %v2044_v50 }
 0x425   :  { %v1873_v58 = vadd.f32 %v1872_v48, %v1867_v54 }
 0x426   :  { %v1864_v61 = vpop.f32.mrf.mxu0  ;;  %2062 = vst [vmem:[#allocation4 + $0x7e] sm:$0x1] %v2046_v57 }
 0x427   :  { %v1994_v62 = vadd.f32 %v1993_v44, %v1873_v58 }
 0x428   :  { %v2802_v42 = vpop.f32.mrf.mxu0 }
 0x429   :  { %v1996_v0 = vmul.f32 %v1995_v63, %v1994_v62 }
 0x42b   :  { %v2340_v3 = vadd.f32 -0.5, %v1996_v0 }
 0x42d   :  { %vm2107_vm14 = vcmp.gt.f32.partialorder %v2340_v3, 0.0 }
 0x42e   :  { %v2341_v53 = vsel %vm2107_vm14, 1.0, %v2893_v1  ;;  %v377_v1 = vcombine.high %v355_v22, %v355_v22 }
 0x42f   :  { %v2117_v6 = vcombine.high %v2341_v53, %v2341_v53  ;;  %v2124_v46 = vrot.slane %v2341_v53, %v3150_v60 }
 0x430   :  { %391 = vst [vmem:[#allocation4 + $0x20] sm:$0x1] %v377_v1  ;;  %510 = vst [vmem:[#allocation4 + $0x21] sm:$0x1] %v377_v1 }
 0x431   :  { %v2131_v13 = vrot.slane %v2117_v6, %v3150_v60  ;;  %v2132_v8 = vcombine.high %v2124_v46, %v2124_v46  ;;  %v2140_v10 = vrot.slane %v2124_v46, %v3150_v60  ;;  %2342 = vst.sshfl [vmem:[#allocation4 + $0xf] sm:$0x1 pattern:$0x73625140] %v2124_v46 }
 0x433   :  { %v2133_v11 = vcombine.high %v2131_v13, %v2131_v13  ;;  %v2147_v12 = vrot.slane %v2131_v13, %v3150_v60  ;;  %v2154_v56 = vrot.slane %v2132_v8, %v3150_v60  ;;  %v2162_v14 = vcombine.high %v2140_v10, %v2140_v10  ;;  %2343 = vst.sshfl [vmem:[#allocation4 + $0x1f] sm:$0x1 pattern:$0x73625140] %v2132_v8 }
 0x434   :  { %2344 = vst.sshfl [vmem:[#allocation4 + $0x4f] sm:$0x1 pattern:$0x73625140] %v2131_v13 }
 0x435   :  { %v2161_v47 = vrot.slane %v2133_v11, %v3150_v60  ;;  %v2163_v15 = vcombine.high %v2147_v12, %v2147_v12  ;;  %v2164_v40 = vcombine.high %v2154_v56, %v2154_v56  ;;  %2176 = vst [vmem:[#allocation4 + $0x2f] sm:$0x1] %v2162_v14  ;;  %2345 = vst.sshfl [vmem:[#allocation4 + $0x5f] sm:$0x1 pattern:$0x73625140] %v2133_v11  ;;  %v1980_v9 = vpop.f32.mrf.mxu1 }
 0x437   :  { %v2165_v2 = vcombine.high %v2161_v47, %v2161_v47  ;;  %2177 = vst [vmem:[#allocation4 + $0x3f] sm:$0x1] %v2164_v40  ;;  %2180 = vst [vmem:[#allocation4 + $0x6f] sm:$0x1] %v2163_v15  ;;  %v2821_v18 = vpop.f32.mrf.mxu1 }
 0x439   :  { %2181 = vst [vmem:[#allocation4 + $0x7f] sm:$0x1] %v2165_v2  ;;  %v1983_v34 = vpop.f32.mrf.mxu1 }
 0x43b   :  { %v2822_v59 = vpop.f32.mrf.mxu1 }
 0x43c   :  { %2882 = shalt.err (!%p2879_p4)
}
 0x43d   :  { %s2899_s27 = smov 128   ;;  %s2900_s28 = smov 8  }
 0x43e   :  { %2196 = dma.vmem_to_hbm [thread:$0]  %s2191_s25, 2048, %s3542_s3, [#allocation5], %s2899_s27, %s2899_s27, %s2900_s28  }
 0x4dc   :  { %v2099_v60 = vpop.f32.mrf.mxu0 }
 0x4de   :  { %v2841_v27 = vpop.f32.mrf.mxu0 }
 0x4e0   :  { %v2102_v28 = vpop.f32.mrf.mxu0 }
 0x4e2   :  { %v2842_v29 = vpop.f32.mrf.mxu0 }
 0x4e3   :  { %2891 = dma.done.wait [#allocation5], 2048  }
 0x4e4   :  { %2892 = vsyncadd [#allocation5], 4294965248 }
 0x4e5   :  { %2200 = vsyncpa [#allocation5], 1 }

</bundles_post_ra>
